<compile_context>
chip_gen: v6e
topology: v6e:2x2x1
jax: 0.10.0
libtpu: 0.0.40
codegen_flags: <defaults>
</compile_context>

<pallas_src>
import functools

import jax
import jax.numpy as jnp
from jax import lax
from jax.experimental import pallas as pl
from jax.experimental.pallas import tpu as pltpu

_VMEM_LIMIT = 64 * 1024 * 1024


# ------------------------------- tiling helpers ----------------------------- #

def _pick_tile(dim, target, align):
    """Largest divisor of `dim` <= target, preferring multiples of 2*align then
    align (256/128 on the lane axes).  Falls back to the largest divisor / dim."""
    if dim <= target:
        return dim
    best_align = None
    best_any = None
    for t in range(target, 0, -1):
        if dim % t:
            continue
        if best_any is None:
            best_any = t
        if t % (2 * align) == 0:
            return t
        if best_align is None and t % align == 0:
            best_align = t
    if best_align is not None:
        return best_align
    if best_any is not None:
        return best_any
    return dim


def _pick_rc(th, w, c):
    """Rows per register-blocked output chunk: keep the f32 tap accumulator to
    roughly 32 vregs so the 49-tap accumulation stays in registers."""
    budget = 32 * 1024
    r = max(1, min(th, budget // max(1, w * c)))
    while th % r:
        r -= 1
    return max(r, 1)


def _erf_gelu(x):
    # Exact (erf-based) GELU, matching PyTorch nn.GELU default.
    return 0.5 * x * (1.0 + lax.erf(x * 0.7071067811865476))


# ------------------------------- fused matmul ------------------------------- #
# grid = (M//tm, N//tn, K//tk); optional (tm, tn) f32 VMEM accumulator when nk>1.
# Prologues: GRN scale/shift (per-image), per-pixel LayerNorm (downsample).
# Epilogues: bias, exact GELU (+ GRN sum-of-squares partials), LayerNorm, residual.

def _make_mm_kernel(*, nk, epilogue, has_grn, has_prologue_ln, has_residual,
                    has_ssq, eps=1e-6):
    def kernel(*refs):
        it = iter(refs)
        x_ref = next(it)
        if has_grn:
            gs_ref = next(it)
            gt_ref = next(it)
        if has_prologue_ln:
            pg_ref = next(it)
            pb_ref = next(it)
        w_ref = next(it)
        b_ref = next(it)
        if epilogue == "ln":
            lg_ref = next(it)
            lb_ref = next(it)
        if has_residual:
            r_ref = next(it)
        o_ref = next(it)
        if has_ssq:
            q_ref = next(it)
        acc_ref = next(it) if nk > 1 else None

        x = x_ref[...]
        if has_grn:
            # GRN apply: x * (gamma*Nx + 1) + beta  (per-image scale, per-chan shift)
            x = x.astype(jnp.float32) * gs_ref[...] + gt_ref[...]
        if has_prologue_ln:
            # Per-pixel LayerNorm of the downsample input (tk == per-pixel C).
            xf = x.astype(jnp.float32)
            mu = jnp.mean(xf, axis=-1, keepdims=True)
            xc = xf - mu
            var = jnp.mean(xc * xc, axis=-1, keepdims=True)
            x = xc * lax.rsqrt(var + eps) * pg_ref[...] + pb_ref[...]
        part = jnp.dot(x.astype(jnp.bfloat16), w_ref[...],
                       preferred_element_type=jnp.float32)

        def epilogue_store(z):
            z = z + b_ref[...]
            if epilogue == "gelu":
                z = _erf_gelu(z)
            elif epilogue == "ln":
                mu = jnp.mean(z, axis=-1, keepdims=True)
                zc = z - mu
                var = jnp.mean(zc * zc, axis=-1, keepdims=True)
                z = zc * lax.rsqrt(var + eps) * lg_ref[...] + lb_ref[...]
            if has_ssq:
                # GRN sum-of-squares partial for this (M-tile, N-tile), written once.
                q_ref[...] = jnp.sum(z * z, axis=0, keepdims=True)
            if has_residual:
                z = z + r_ref[...].astype(jnp.float32)
            o_ref[...] = z.astype(o_ref.dtype)

        if nk == 1:
            epilogue_store(part)
        else:
            k = pl.program_id(2)

            @pl.when(k == 0)
            def _():
                acc_ref[...] = jnp.zeros_like(acc_ref)

            acc_ref[...] += part

            @pl.when(k == pl.num_programs(2) - 1)
            def _():
                epilogue_store(acc_ref[...])

    return kernel


def matmul_fused(x, w, b, *, epilogue="bias", ln=None, grn=None, residual=None,
                 prologue_ln=None, ssq=False, rows_per_image=None, full_tn=False,
                 tm_target=512, tn_target=512, tk_target=512,
                 out_dtype=jnp.bfloat16):
    """Tiled (M, K) @ (K, N) + b with fused prologue/epilogue.

    epilogue:    "bias" | "gelu" | "ln"
    grn:         (scale (B, K), shift (1, K)) prologue; needs rows_per_image.
    prologue_ln: (g (Cpix,), b (Cpix,)) per-pixel LN prologue; forces tk = Cpix.
    residual:    (M, N) added in the epilogue.
    ssq:         also return per-M-tile sum-of-squares partials (M//tm, N).
    """
    M, K = x.shape
    N = w.shape[1]

    if prologue_ln is not None:
        tk = int(prologue_ln[0].shape[0])
        assert K % tk == 0
    else:
        tk = _pick_tile(K, tk_target, 128)
    nk = K // tk

    tn = N if (epilogue == "ln" or full_tn) else _pick_tile(N, tn_target, 128)
    m_unit = rows_per_image if rows_per_image is not None else M
    tm = _pick_tile(m_unit, tm_target, 8)
    tiles_per_image = m_unit // tm

    grid = (M // tm, N // tn, nk)

    in_specs = [pl.BlockSpec((tm, tk), lambda i, j, k: (i, k))]
    args = [x]
    if grn is not None:
        scale, shift = grn
        in_specs += [
            pl.BlockSpec((1, tk), lambda i, j, k, t=tiles_per_image: (i // t, k)),
            pl.BlockSpec((1, tk), lambda i, j, k: (0, k)),
        ]
        args += [scale, shift]
    if prologue_ln is not None:
        pg, pb = prologue_ln
        in_specs += [pl.BlockSpec((1, tk), lambda i, j, k: (0, 0)),
                     pl.BlockSpec((1, tk), lambda i, j, k: (0, 0))]
        args += [pg.reshape(1, tk), pb.reshape(1, tk)]
    in_specs += [
        pl.BlockSpec((tk, tn), lambda i, j, k: (k, j)),
        pl.BlockSpec((1, tn), lambda i, j, k: (0, j)),
    ]
    args += [w, b.reshape(1, N)]
    if epilogue == "ln":
        g, bt = ln
        in_specs += [pl.BlockSpec((1, tn), lambda i, j, k: (0, j)),
                     pl.BlockSpec((1, tn), lambda i, j, k: (0, j))]
        args += [g.reshape(1, N), bt.reshape(1, N)]
    if residual is not None:
        in_specs.append(pl.BlockSpec((tm, tn), lambda i, j, k: (i, j)))
        args.append(residual)

    out_shape = [jax.ShapeDtypeStruct((M, N), out_dtype)]
    out_specs = [pl.BlockSpec((tm, tn), lambda i, j, k: (i, j))]
    if ssq:
        out_shape.append(jax.ShapeDtypeStruct((M // tm, N), jnp.float32))
        out_specs.append(pl.BlockSpec((1, tn), lambda i, j, k: (i, j)))

    scratch = [pltpu.VMEM((tm, tn), jnp.float32)] if nk > 1 else []

    kernel = _make_mm_kernel(nk=nk, epilogue=epilogue, has_grn=grn is not None,
                             has_prologue_ln=prologue_ln is not None,
                             has_residual=residual is not None, has_ssq=ssq)

    return pl.pallas_call(
        kernel,
        out_shape=out_shape if ssq else out_shape[0],
        grid=grid,
        in_specs=in_specs,
        out_specs=out_specs if ssq else out_specs[0],
        scratch_shapes=scratch,
        compiler_params=pltpu.CompilerParams(
            dimension_semantics=("parallel", "parallel", "arbitrary"),
            vmem_limit_bytes=_VMEM_LIMIT),
    )(*args)


# ------------------------ depthwise 7x7 conv + LayerNorm --------------------- #
# Input stays in HBM (pl.ANY).  Per (image, row tile) a (th+6)-row halo slab is
# DMA'd into a bounded VMEM scratch (W halo columns kept zero); the 49-tap
# accumulation is register-blocked over small output chunks with one store each,
# and the per-pixel LayerNorm is fused before the bf16 store.

def _dwconv7_ln_kernel(x_hbm, w_ref, bdw_ref, g_ref, b_ref, o_ref, xpad, sem,
                       *, eps, H, W, C, th, rc):
    n = pl.program_id(0)
    i = pl.program_id(1)
    n_tiles = H // th
    r0 = i * th

    # Keep the 3-column W halo zero every step (iterations stay independent).
    zcol = jnp.zeros((th + 6, 3, C), xpad.dtype)
    xpad[:, 0:3, :] = zcol
    xpad[:, W + 3:W + 6, :] = zcol
    zrow = jnp.zeros((3, W, C), xpad.dtype)

    def copy_rows(src_row, dst_row, nrows):
        cp = pltpu.make_async_copy(
            x_hbm.at[n, pl.ds(src_row, nrows), :, :],
            xpad.at[pl.ds(dst_row, nrows), pl.ds(3, W), :],
            sem)
        cp.start()
        cp.wait()
        # TODO(synk): double-buffer the halo-slab DMA to overlap it with compute.

    if n_tiles == 1:
        xpad[0:3, 3:W + 3, :] = zrow
        xpad[th + 3:th + 6, 3:W + 3, :] = zrow
        copy_rows(0, 3, H)
    else:
        @pl.when(i == 0)
        def _():
            xpad[0:3, 3:W + 3, :] = zrow
            copy_rows(0, 3, th + 3)

        @pl.when(i == n_tiles - 1)
        def _():
            xpad[th + 3:th + 6, 3:W + 3, :] = zrow
            copy_rows(r0 - 3, 0, th + 3)

        @pl.when(jnp.logical_and(i > 0, i < n_tiles - 1))
        def _():
            copy_rows(r0 - 3, 0, th + 6)

    def do_chunk(j0):
        acc = jnp.zeros((rc, W, C), jnp.float32)
        for kh in range(7):
            for kw in range(7):
                xs = xpad[pl.ds(j0 + kh, rc), pl.ds(kw, W), :].astype(jnp.float32)
                acc = acc + xs * w_ref[kh, kw, :]
        z = acc + bdw_ref[...]
        mu = jnp.mean(z, axis=-1, keepdims=True)
        zc = z - mu
        var = jnp.mean(zc * zc, axis=-1, keepdims=True)
        y = zc * lax.rsqrt(var + eps) * g_ref[...] + b_ref[...]
        o_ref[0, pl.ds(j0, rc), :, :] = y.astype(o_ref.dtype)

    n_chunks = th // rc
    if n_chunks <= 8:
        for c0 in range(n_chunks):
            do_chunk(c0 * rc)
    else:
        @pl.loop(0, n_chunks)
        def _(c0):
            do_chunk(c0 * rc)


def depthwise_conv7_ln(x, w, bdw, g, b, eps=1e-6):
    """Depthwise 7x7 (stride 1, pad 3) fused with the following LayerNorm."""
    x = x.astype(jnp.bfloat16)
    N, H, W, C = x.shape
    th = _pick_tile(H, 64, 1)
    if H // th > 1 and th < 8:          # degenerate divisors: keep one tile
        th = H
    rc = _pick_rc(th, W, C)
    kernel = functools.partial(_dwconv7_ln_kernel, eps=eps, H=H, W=W, C=C,
                               th=th, rc=rc)
    return pl.pallas_call(
        kernel,
        out_shape=jax.ShapeDtypeStruct((N, H, W, C), jnp.bfloat16),
        grid=(N, H // th),
        in_specs=[
            pl.BlockSpec(memory_space=pl.ANY),   # x stays in HBM; halo slab DMA'd
            pl.BlockSpec((7, 7, C), lambda n, i: (0, 0, 0)),
            pl.BlockSpec((1, C), lambda n, i: (0, 0)),
            pl.BlockSpec((1, C), lambda n, i: (0, 0)),
            pl.BlockSpec((1, C), lambda n, i: (0, 0)),
        ],
        out_specs=pl.BlockSpec((1, th, W, C), lambda n, i: (n, i, 0, 0)),
        scratch_shapes=[pltpu.VMEM((th + 6, W + 6, C), jnp.bfloat16),
                        pltpu.SemaphoreType.DMA],
        compiler_params=pltpu.CompilerParams(
            dimension_semantics=("parallel", "parallel"),
            vmem_limit_bytes=_VMEM_LIMIT),
    )(x, w, bdw.reshape(1, C), g.reshape(1, C), b.reshape(1, C))


# ----------------------- global pool + final LayerNorm ----------------------- #

def _pool_norm_kernel(x_ref, g_ref, b_ref, o_ref, *, eps):
    x = x_ref[...].astype(jnp.float32)                 # (1, H, W, C)
    m = jnp.mean(jnp.mean(x, axis=2), axis=1)          # (1, C)
    mu = jnp.mean(m, axis=-1, keepdims=True)
    xc = m - mu
    var = jnp.mean(xc * xc, axis=-1, keepdims=True)
    y = xc * lax.rsqrt(var + eps)
    o_ref[...] = (y * g_ref[...] + b_ref[...]).astype(o_ref.dtype)


def pool_norm(x, g, b, eps=1e-6):
    N, H, W, C = x.shape
    return pl.pallas_call(
        functools.partial(_pool_norm_kernel, eps=eps),
        out_shape=jax.ShapeDtypeStruct((N, C), jnp.float32),
        grid=(N,),
        in_specs=[
            pl.BlockSpec((1, H, W, C), lambda n: (n, 0, 0, 0)),
            pl.BlockSpec((1, C), lambda n: (0, 0)),
            pl.BlockSpec((1, C), lambda n: (0, 0)),
        ],
        out_specs=pl.BlockSpec((1, C), lambda n: (n, 0)),
        compiler_params=pltpu.CompilerParams(dimension_semantics=("parallel",)),
    )(x, g.reshape(1, C), b.reshape(1, C))


# ----------------------------- model glue (plain JAX) ----------------------- #

def _patchify(x, p):
    """Non-overlapping p x p patches -> tokens (kernel==stride conv as matmul)."""
    N, H, W, C = x.shape
    x = x.reshape(N, H // p, p, W // p, p, C)
    x = x.transpose(0, 1, 3, 2, 4, 5)
    return x.reshape(N * (H // p) * (W // p), p * p * C), (N, H // p, W // p)


def convnext_block(x, blk):
    """ConvNeXtV2 block: dwconv7+LN -> pw1+GELU(+ssq) -> GRN -> pw2 (+residual)."""
    N, H, W, C = x.shape
    M = N * H * W
    residual = x.reshape(M, C)                                       # bf16

    y = depthwise_conv7_ln(x, blk["dwconv_w"], blk["dwconv_b"],
                           blk["norm"]["g"], blk["norm"]["b"])       # (N,H,W,C) bf16

    # pointwise expansion + exact GELU, with fused GRN sum-of-squares partials
    h, ssq_part = matmul_fused(y.reshape(M, C), blk["pw1"]["w"], blk["pw1"]["b"],
                               epilogue="gelu", ssq=True,
                               rows_per_image=H * W)                 # (M,4C) bf16

    tiles_per_image = ssq_part.shape[0] // N
    ssq = ssq_part.reshape(N, tiles_per_image, -1).sum(axis=1)       # (N, 4C)
    gx = jnp.sqrt(ssq)                                               # ||h||_2 over HW
    nx = gx / (jnp.mean(gx, axis=-1, keepdims=True) + 1e-6)
    scale = blk["grn_gamma"][None, :] * nx + 1.0                     # (N, 4C)
    shift = blk["grn_beta"].reshape(1, -1)                           # (1, 4C)

    # GRN apply + pointwise projection + bias + block residual, all fused (tn = N)
    out = matmul_fused(h, blk["pw2"]["w"], blk["pw2"]["b"],
                       grn=(scale, shift), residual=residual,
                       rows_per_image=H * W, full_tn=True)
    return out.reshape(N, H, W, C)


def forward_features(params, x_nhwc):
    x = x_nhwc.astype(jnp.float32)
    for i in range(4):
        ds = params["downsample"][i]
        if i == 0:
            # stem: 4x4/stride-4 conv with fused LayerNorm epilogue
            tok, (N, H, W) = _patchify(x, 4)
            tok = matmul_fused(tok, ds["conv"]["w"], ds["conv"]["b"],
                               epilogue="ln",
                               ln=(ds["norm"]["g"], ds["norm"]["b"]))
            x = tok.reshape(N, H, W, -1)
        else:
            # downsample: LayerNorm fused as per-pixel prologue of the 2x2/stride-2 conv
            tok, (N, H2, W2) = _patchify(x, 2)
            tok = matmul_fused(tok, ds["conv"]["w"], ds["conv"]["b"],
                               prologue_ln=(ds["norm"]["g"], ds["norm"]["b"]))
            x = tok.reshape(N, H2, W2, -1)
        for blk in params["stages"][i]:
            x = convnext_block(x, blk)
    # forward_features: global average pool over (H, W) then final LayerNorm -> (N, C)
    return pool_norm(x, params["final_norm"]["g"], params["final_norm"]["b"])


def init_params(key, in_chans, depths, dims):
    def nxt():
        nonlocal key
        key, sub = jax.random.split(key)
        return sub

    def dense(k_in, k_out):
        # matmul weights stored in bf16 (MXU operands); bias stays f32.
        w = 0.02 * jax.random.normal(nxt(), (k_in, k_out), jnp.float32)
        return {"w": w.astype(jnp.bfloat16), "b": jnp.zeros((k_out,), jnp.float32)}

    def ln(c):
        return {"g": jnp.ones((c,), jnp.float32), "b": jnp.zeros((c,), jnp.float32)}

    params = {}
    downsample = [{"conv": dense(4 * 4 * in_chans, dims[0]), "norm": ln(dims[0])}]
    for i in range(3):
        downsample.append({"norm": ln(dims[i]), "conv": dense(2 * 2 * dims[i], dims[i + 1])})
    params["downsample"] = downsample

    stages = []
    for i in range(4):
        blocks = []
        for _ in range(depths[i]):
            d = dims[i]
            blocks.append({
                "dwconv_w": 0.02 * jax.random.normal(nxt(), (7, 7, d), jnp.float32),
                "dwconv_b": jnp.zeros((d,), jnp.float32),
                "norm": ln(d),
                "pw1": dense(d, 4 * d),
                # GRN params are zero-init in the reference; small random values here
                # so the GRN path is exercised numerically.
                "grn_gamma": 0.02 * jax.random.normal(nxt(), (4 * d,), jnp.float32),
                "grn_beta": 0.02 * jax.random.normal(nxt(), (4 * d,), jnp.float32),
                "pw2": dense(4 * d, d),
            })
        stages.append(blocks)
    params["stages"] = stages
    params["final_norm"] = ln(dims[-1])
    return params


class CusttomConvNextV2:
    """Pallas version of CusttomConvNextV2: forward(x, prompt) == ConvNeXtV2.forward_features(x).

    The real module is convnextv2_large (depths=(3,3,27,3), dims=(192,384,768,1536),
    hidden_dim=1536) loaded from a checkpoint; here weights are synthetic and the
    config is a constructor argument so the demo runs at small scale.
    """

    def __init__(self, key, in_chans=3, depths=(3, 3, 27, 3), dims=(192, 384, 768, 1536)):
        self.hidden_dim = dims[-1]
        self.params = init_params(key, in_chans, depths, dims)

    def forward(self, x_nchw, prompt=None, batch_img_metas=None):
        # PyTorch feeds NCHW; kernels use NHWC.
        x = jnp.transpose(x_nchw, (0, 2, 3, 1))
        return forward_features(self.params, x)

    __call__ = forward


if __name__ == "__main__":
    key = jax.random.PRNGKey(0)
    # Small stand-in config for convnextv2_large (same architecture, reduced size).
    depths = (1, 1, 2, 1)
    dims = (16, 32, 64, 128)
    model = CusttomConvNextV2(key, in_chans=3, depths=depths, dims=dims)

    # NCHW input, spatial divisible by 32 (stem /4 then three /2 downsamples).
    x = jax.random.normal(jax.random.PRNGKey(0), (2, 3, 64, 64), jnp.float32)

    out = model.forward(x, prompt=None)
    out = jax.block_until_ready(out)
    assert out.shape == (2, dims[-1]), out.shape
    assert jnp.all(jnp.isfinite(out))
    print("KERNEL_OK")
</pallas_src>

<mosaic_0001>
module attributes {stable_mosaic.version = 11 : i64} {
  func.func @kernel(%arg0: i32, %arg1: i32, %arg2: i32, %arg3: memref<512x48xf32, #tpu.memory_space<vmem>>, %arg4: memref<48x16xbf16, #tpu.memory_space<vmem>>, %arg5: memref<1x16xf32, #tpu.memory_space<vmem>>, %arg6: memref<1x16xf32, #tpu.memory_space<vmem>>, %arg7: memref<1x16xf32, #tpu.memory_space<vmem>>, %arg8: memref<512x16xbf16, #tpu.memory_space<vmem>>) attributes {dimension_semantics = [#tpu.dimension_semantics<parallel>, #tpu.dimension_semantics<parallel>, #tpu.dimension_semantics<arbitrary>], iteration_bounds = array<i64: 1, 1, 1>, scalar_prefetch = 0 : i64, scratch_operands = 0 : i64, tpu.core_type = #tpu.core_type<tc>, window_params = [{transform_indices = @transform_0, window_bounds = array<i64: 512, 48>}, {transform_indices = @transform_1, window_bounds = array<i64: 48, 16>}, {transform_indices = @transform_2, window_bounds = array<i64: 1, 16>}, {transform_indices = @transform_3, window_bounds = array<i64: 1, 16>}, {transform_indices = @transform_4, window_bounds = array<i64: 1, 16>}, {transform_indices = @transform_5, window_bounds = array<i64: 512, 16>}]} {
    %c0 = arith.constant 0 : index
    %c0_0 = arith.constant 0 : index
    %0 = vector.load %arg3[%c0, %c0_0] : memref<512x48xf32, #tpu.memory_space<vmem>>, vector<512x48xf32>
    %1 = arith.truncf %0 : vector<512x48xf32> to vector<512x48xbf16>
    %c0_1 = arith.constant 0 : index
    %c0_2 = arith.constant 0 : index
    %2 = vector.load %arg4[%c0_1, %c0_2] : memref<48x16xbf16, #tpu.memory_space<vmem>>, vector<48x16xbf16>
    %cst = arith.constant dense<0.000000e+00> : vector<512x16xf32>
    %3 = tpu.matmul %1, %2, %cst {dimension_numbers = #tpu.dot_dimension_numbers<[1], [0], [0], [1], [0, 0, 1, 1], [], []>} : vector<512x48xbf16>, vector<48x16xbf16>, vector<512x16xf32> -> vector<512x16xf32>
    %c0_3 = arith.constant 0 : index
    %c0_4 = arith.constant 0 : index
    %4 = vector.load %arg5[%c0_3, %c0_4] : memref<1x16xf32, #tpu.memory_space<vmem>>, vector<1x16xf32>
    %5 = vector.broadcast %4 : vector<1x16xf32> to vector<512x16xf32>
    %6 = arith.addf %3, %5 : vector<512x16xf32>
    %cst_5 = arith.constant dense<0.000000e+00> : vector<512xf32>
    %7 = vector.multi_reduction <add>, %6, %cst_5 [1] : vector<512x16xf32> to vector<512xf32>
    %8 = vector.shape_cast %7 : vector<512xf32> to vector<512x1xf32>
    %cst_6 = arith.constant 1.600000e+01 : f32
    %9 = vector.broadcast %cst_6 : f32 to vector<512x1xf32>
    %10 = arith.divf %8, %9 : vector<512x1xf32>
    %11 = vector.broadcast %10 : vector<512x1xf32> to vector<512x16xf32>
    %12 = arith.subf %6, %11 : vector<512x16xf32>
    %13 = arith.mulf %12, %12 : vector<512x16xf32>
    %cst_7 = arith.constant dense<0.000000e+00> : vector<512xf32>
    %14 = vector.multi_reduction <add>, %13, %cst_7 [1] : vector<512x16xf32> to vector<512xf32>
    %15 = vector.shape_cast %14 : vector<512xf32> to vector<512x1xf32>
    %cst_8 = arith.constant 1.600000e+01 : f32
    %16 = vector.broadcast %cst_8 : f32 to vector<512x1xf32>
    %17 = arith.divf %15, %16 : vector<512x1xf32>
    %cst_9 = arith.constant 9.99999997E-7 : f32
    %18 = vector.broadcast %cst_9 : f32 to vector<512x1xf32>
    %19 = arith.addf %17, %18 : vector<512x1xf32>
    %20 = math.rsqrt %19 : vector<512x1xf32>
    %21 = vector.broadcast %20 : vector<512x1xf32> to vector<512x16xf32>
    %22 = arith.mulf %12, %21 : vector<512x16xf32>
    %c0_10 = arith.constant 0 : index
    %c0_11 = arith.constant 0 : index
    %23 = vector.load %arg6[%c0_10, %c0_11] : memref<1x16xf32, #tpu.memory_space<vmem>>, vector<1x16xf32>
    %24 = vector.broadcast %23 : vector<1x16xf32> to vector<512x16xf32>
    %25 = arith.mulf %22, %24 : vector<512x16xf32>
    %c0_12 = arith.constant 0 : index
    %c0_13 = arith.constant 0 : index
    %26 = vector.load %arg7[%c0_12, %c0_13] : memref<1x16xf32, #tpu.memory_space<vmem>>, vector<1x16xf32>
    %27 = vector.broadcast %26 : vector<1x16xf32> to vector<512x16xf32>
    %28 = arith.addf %25, %27 : vector<512x16xf32>
    %29 = arith.truncf %28 : vector<512x16xf32> to vector<512x16xbf16>
    %c0_14 = arith.constant 0 : index
    %c0_15 = arith.constant 0 : index
    %30 = vector.load %arg8[%c0_14, %c0_15] : memref<512x16xbf16, #tpu.memory_space<vmem>>, vector<512x16xbf16>
    tpu.vector_store %arg8[%c0_14, %c0_15], %29 {strides = array<i32>} : memref<512x16xbf16, #tpu.memory_space<vmem>>, vector<512x16xbf16>,
    return
  }
  func.func @transform_0(%arg0: i32, %arg1: i32, %arg2: i32) -> (i32, i32) {
    %c0_i32 = arith.constant 0 : i32
    return %arg0, %arg2 : i32, i32
  }
  func.func @transform_1(%arg0: i32, %arg1: i32, %arg2: i32) -> (i32, i32) {
    %c0_i32 = arith.constant 0 : i32
    return %arg2, %arg1 : i32, i32
  }
  func.func @transform_2(%arg0: i32, %arg1: i32, %arg2: i32) -> (i32, i32) {
    %c0_i32 = arith.constant 0 : i32
    %c0_i32_0 = arith.constant 0 : i32
    return %c0_i32, %arg1 : i32, i32
  }
  func.func @transform_3(%arg0: i32, %arg1: i32, %arg2: i32) -> (i32, i32) {
    %c0_i32 = arith.constant 0 : i32
    %c0_i32_0 = arith.constant 0 : i32
    return %c0_i32, %arg1 : i32, i32
  }
  func.func @transform_4(%arg0: i32, %arg1: i32, %arg2: i32) -> (i32, i32) {
    %c0_i32 = arith.constant 0 : i32
    %c0_i32_0 = arith.constant 0 : i32
    return %c0_i32, %arg1 : i32, i32
  }
  func.func @transform_5(%arg0: i32, %arg1: i32, %arg2: i32) -> (i32, i32) {
    %c0_i32 = arith.constant 0 : i32
    return %arg0, %arg1 : i32, i32
  }
}

</mosaic_0001>

<bundles_post_ra>
// kernel: tpu_custom_call.1
= control target key start
LH: loop header
LB: loop body
LE: loop exit
PB: predicated region body
PF: predicated region fallthrough
CT: control target
= control target key end

     0   :  { %vm148_vm0 = vcmask 392192   ;;  %vm534_vm1 = vcmask 130048   ;;  %vm1766_vm2 = vcmask 125952   ;;  %s3685_s1 = inlined_call_operand.vmem [shape: bf16[48,16], index: 1, kind: input, shape index: {}]   ;;  %s3686_s0 = inlined_call_operand.vmem [shape: f32[512,48], index: 0, kind: input, shape index: {}]   ;;  %s3687_s2 = inlined_call_operand.vmem [shape: f32[1,16], index: 2, kind: input, shape index: {}]   ;;  %s3688_s3 = inlined_call_operand.vmem [shape: f32[1,16], index: 3, kind: input, shape index: {}]   ;;  %s3689_s4 = inlined_call_operand.vmem [shape: f32[1,16], index: 4, kind: input, shape index: {}]   ;;  %s3690_s5 = inlined_call_operand.vmem [shape: bf16[512,16], index: 5, kind: output, shape index: {}]  }
   0x1   :  { %v2112_v0 = vld [vmem:[%s3685_s1 + $0x10] sm:$0xff]   ;;  %v2113_v1 = vld [vmem:[%s3685_s1 + $0x8] sm:$0xff]   ;;  %v21_v2 = vld [vmem:[%s3686_s0] sm:$0xff] }
   0x2   :  { %2036 = vmatprep.subr.bf16.mxu0 %v2112_v0  ;;  %2106 = vmatprep.subr.bf16.mxu1 %v2112_v0  ;;  %v22_v3 = vld [vmem:[%s3686_s0 + $0x8] sm:$0xff]  ;;  %v53_v4 = vld [vmem:[%s3686_s0 + $0x100] sm:$0xff]  ;;  %v23_v9 = vld [vmem:[%s3686_s0 + $0x10] sm:$0xff] }
   0x3   :  { %2037 = vmatpush3.bf16.msra.mxu0 %v2112_v0  ;;  %2109 = vmatpush3.bf16.msra.mxu1 %v2112_v0  ;;  %v2114_v5 = vld [vmem:[%s3685_s1] sm:$0xff]   ;;  %v85_v6 = vpack.c.bf16 %v22_v3, %v21_v2  ;;  %v54_v7 = vld [vmem:[%s3686_s0 + $0x108] sm:$0xff]  ;;  %v24_v10 = vld [vmem:[%s3686_s0 + $0x18] sm:$0xff] }
   0x4   :  { %2038 = vmatprep.subr.bf16.mxu0 %v2113_v1  ;;  %2107 = vmatprep.subr.bf16.mxu1 %v2113_v1  ;;  %v101_v8 = vpack.c.bf16 %v54_v7, %v53_v4  ;;  %v55_v11 = vld [vmem:[%s3686_s0 + $0x110] sm:$0xff]  ;;  %v56_v12 = vld [vmem:[%s3686_s0 + $0x118] sm:$0xff]  ;;  %v25_v13 = vld [vmem:[%s3686_s0 + $0x20] sm:$0xff]  ;;  %v86_v17 = vpack.c.bf16 %v24_v10, %v23_v9 }
   0x5   :  { %2042 = vmatprep.mubr.msk.bf16.mxu0 %vm148_vm0, %v85_v6  ;;  %v26_v14 = vld [vmem:[%s3686_s0 + $0x28] sm:$0xff]  ;;  %v57_v15 = vld [vmem:[%s3686_s0 + $0x120] sm:$0xff]  ;;  %v102_v18 = vpack.c.bf16 %v56_v12, %v55_v11  ;;  %v27_v21 = vld [vmem:[%s3686_s0 + $0x30] sm:$0xff] }
   0x6   :  { %v58_v16 = vld [vmem:[%s3686_s0 + $0x128] sm:$0xff]  ;;  %2074 = vmatprep.mubr.msk.bf16.mxu1 %vm148_vm0, %v101_v8  ;;  %v87_v19 = vpack.c.bf16 %v26_v14, %v25_v13  ;;  %v28_v22 = vld [vmem:[%s3686_s0 + $0x38] sm:$0xff]  ;;  %v59_v23 = vld [vmem:[%s3686_s0 + $0x130] sm:$0xff] }
   0x7   :  { %2039 = vmatpush3.bf16.msra.mxu0 %v2113_v1  ;;  %2110 = vmatpush3.bf16.msra.mxu1 %v2113_v1  ;;  %v103_v20 = vpack.c.bf16 %v58_v16, %v57_v15  ;;  %v60_v24 = vld [vmem:[%s3686_s0 + $0x138] sm:$0xff]  ;;  %v29_v25 = vld [vmem:[%s3686_s0 + $0x40] sm:$0xff]  ;;  %v30_v26 = vld [vmem:[%s3686_s0 + $0x48] sm:$0xff]  ;;  %v88_v29 = vpack.c.bf16 %v28_v22, %v27_v21 }
   0x8   :  { %2040 = vmatprep.subr.bf16.mxu0 %v2114_v5  ;;  %2108 = vmatprep.subr.bf16.mxu1 %v2114_v5  ;;  %v61_v27 = vld [vmem:[%s3686_s0 + $0x140] sm:$0xff]  ;;  %v62_v28 = vld [vmem:[%s3686_s0 + $0x148] sm:$0xff]  ;;  %v104_v30 = vpack.c.bf16 %v60_v24, %v59_v23  ;;  %v89_v31 = vpack.c.bf16 %v30_v26, %v29_v25  ;;  %v31_v33 = vld [vmem:[%s3686_s0 + $0x50] sm:$0xff] }
   0x9   :  { %v105_v32 = vpack.c.bf16 %v62_v28, %v61_v27  ;;  %v32_v34 = vld [vmem:[%s3686_s0 + $0x58] sm:$0xff]  ;;  %v63_v35 = vld [vmem:[%s3686_s0 + $0x150] sm:$0xff]  ;;  %v33_v37 = vld [vmem:[%s3686_s0 + $0x60] sm:$0xff] }
   0xa   :  { %v64_v36 = vld [vmem:[%s3686_s0 + $0x158] sm:$0xff]  ;;  %v34_v38 = vld [vmem:[%s3686_s0 + $0x68] sm:$0xff]  ;;  %v65_v39 = vld [vmem:[%s3686_s0 + $0x160] sm:$0xff]  ;;  %v90_v41 = vpack.c.bf16 %v32_v34, %v31_v33 }
   0xb   :  { %2041 = vmatpush3.bf16.msra.mxu0 %v2114_v5  ;;  %2111 = vmatpush3.bf16.msra.mxu1 %v2114_v5  ;;  %v66_v40 = vld [vmem:[%s3686_s0 + $0x168] sm:$0xff]  ;;  %v106_v42 = vpack.c.bf16 %v64_v36, %v63_v35  ;;  %v91_v43 = vpack.c.bf16 %v34_v38, %v33_v37  ;;  %v35_v45 = vld [vmem:[%s3686_s0 + $0x70] sm:$0xff]  ;;  %v36_v46 = vld [vmem:[%s3686_s0 + $0x78] sm:$0xff] }
   0xc   :  { %v107_v44 = vpack.c.bf16 %v66_v40, %v65_v39  ;;  %v67_v47 = vld [vmem:[%s3686_s0 + $0x170] sm:$0xff]  ;;  %v68_v48 = vld [vmem:[%s3686_s0 + $0x178] sm:$0xff]  ;;  %v37_v49 = vld [vmem:[%s3686_s0 + $0x80] sm:$0xff]  ;;  %v92_v53 = vpack.c.bf16 %v36_v46, %v35_v45 }
   0xd   :  { %v38_v50 = vld [vmem:[%s3686_s0 + $0x88] sm:$0xff]  ;;  %v69_v51 = vld [vmem:[%s3686_s0 + $0x180] sm:$0xff]  ;;  %v108_v54 = vpack.c.bf16 %v68_v48, %v67_v47  ;;  %v39_v57 = vld [vmem:[%s3686_s0 + $0x90] sm:$0xff] }
   0xe   :  { %2043 = vmatmul.mubr.msk.bf16.vlgmr.msra.gmra.mxu0 %vm148_vm0, %v86_v17  ;;  %2075 = vmatmul.mubr.msk.bf16.vlgmr.msra.gmra.mxu1 %vm148_vm0, %v102_v18  ;;  %v70_v52 = vld [vmem:[%s3686_s0 + $0x188] sm:$0xff]  ;;  %v93_v55 = vpack.c.bf16 %v38_v50, %v37_v49  ;;  %v40_v58 = vld [vmem:[%s3686_s0 + $0x98] sm:$0xff]  ;;  %v71_v59 = vld [vmem:[%s3686_s0 + $0x190] sm:$0xff] }
   0xf   :  { %2046 = vmatprep.mubr.msk.bf16.mxu0 %vm148_vm0, %v87_v19  ;;  %2078 = vmatprep.mubr.msk.bf16.mxu1 %vm148_vm0, %v103_v20  ;;  %v109_v56 = vpack.c.bf16 %v70_v52, %v69_v51  ;;  %v72_v60 = vld [vmem:[%s3686_s0 + $0x198] sm:$0xff]  ;;  %v41_v61 = vld [vmem:[%s3686_s0 + $0xa0] sm:$0xff]  ;;  %v42_v62 = vld [vmem:[%s3686_s0 + $0xa8] sm:$0xff]  ;;  %v94_v1 = vpack.c.bf16 %v40_v58, %v39_v57 }
  0x10   :  { %v73_v63 = vld [vmem:[%s3686_s0 + $0x1a0] sm:$0xff]  ;;  %v74_v0 = vld [vmem:[%s3686_s0 + $0x1a8] sm:$0xff]  ;;  %v110_v2 = vpack.c.bf16 %v72_v60, %v71_v59  ;;  %v95_v3 = vpack.c.bf16 %v42_v62, %v41_v61  ;;  %v43_v5 = vld [vmem:[%s3686_s0 + $0xb0] sm:$0xff] }
  0x11   :  { %v111_v4 = vpack.c.bf16 %v74_v0, %v73_v63  ;;  %v44_v6 = vld [vmem:[%s3686_s0 + $0xb8] sm:$0xff]  ;;  %v75_v7 = vld [vmem:[%s3686_s0 + $0x1b0] sm:$0xff]  ;;  %v45_v9 = vld [vmem:[%s3686_s0 + $0xc0] sm:$0xff] }
  0x12   :  { %v76_v8 = vld [vmem:[%s3686_s0 + $0x1b8] sm:$0xff]  ;;  %v46_v10 = vld [vmem:[%s3686_s0 + $0xc8] sm:$0xff]  ;;  %v77_v11 = vld [vmem:[%s3686_s0 + $0x1c0] sm:$0xff]  ;;  %v96_v13 = vpack.c.bf16 %v44_v6, %v43_v5 }
  0x13   :  { %v78_v12 = vld [vmem:[%s3686_s0 + $0x1c8] sm:$0xff]  ;;  %v112_v14 = vpack.c.bf16 %v76_v8, %v75_v7  ;;  %v97_v15 = vpack.c.bf16 %v46_v10, %v45_v9  ;;  %v47_v17 = vld [vmem:[%s3686_s0 + $0xd0] sm:$0xff]  ;;  %v48_v18 = vld [vmem:[%s3686_s0 + $0xd8] sm:$0xff] }
  0x14   :  { %v113_v16 = vpack.c.bf16 %v78_v12, %v77_v11  ;;  %v79_v19 = vld [vmem:[%s3686_s0 + $0x1d0] sm:$0xff]  ;;  %v80_v20 = vld [vmem:[%s3686_s0 + $0x1d8] sm:$0xff]  ;;  %v49_v21 = vld [vmem:[%s3686_s0 + $0xe0] sm:$0xff]  ;;  %v98_v25 = vpack.c.bf16 %v48_v18, %v47_v17 }
  0x15   :  { %v50_v22 = vld [vmem:[%s3686_s0 + $0xe8] sm:$0xff]  ;;  %v81_v23 = vld [vmem:[%s3686_s0 + $0x1e0] sm:$0xff]  ;;  %v114_v26 = vpack.c.bf16 %v80_v20, %v79_v19 }
  0x16   :  { %2047 = vmatmul.mubr.msk.bf16.gmra.mxu0 %vm148_vm0, %v88_v29  ;;  %2079 = vmatmul.mubr.msk.bf16.gmra.mxu1 %vm148_vm0, %v104_v30  ;;  %v82_v24 = vld [vmem:[%s3686_s0 + $0x1e8] sm:$0xff]  ;;  %v99_v27 = vpack.c.bf16 %v50_v22, %v49_v21  ;;  %v51_v29 = vld [vmem:[%s3686_s0 + $0xf0] sm:$0xff]  ;;  %v52_v30 = vld [vmem:[%s3686_s0 + $0xf8] sm:$0xff] }
  0x17   :  { %2050 = vmatprep.mubr.msk.bf16.mxu0 %vm148_vm0, %v89_v31  ;;  %2082 = vmatprep.mubr.msk.bf16.mxu1 %vm148_vm0, %v105_v32  ;;  %v115_v28 = vpack.c.bf16 %v82_v24, %v81_v23  ;;  %v83_v31 = vld [vmem:[%s3686_s0 + $0x1f0] sm:$0xff]  ;;  %v84_v32 = vld [vmem:[%s3686_s0 + $0x1f8] sm:$0xff]  ;;  %v100_v33 = vpack.c.bf16 %v52_v30, %v51_v29  ;;  %v2511_v35 = vld [vmem:[%s3687_s2] ss:$0 sm:$0xff] }
  0x18   :  { %v116_v34 = vpack.c.bf16 %v84_v32, %v83_v31 }
  0x1e   :  { %2051 = vmatmul.mubr.msk.bf16.gmra.mxu0 %vm148_vm0, %v90_v41  ;;  %2083 = vmatmul.mubr.msk.bf16.gmra.mxu1 %vm148_vm0, %v106_v42 }
  0x1f   :  { %2054 = vmatprep.mubr.msk.bf16.mxu0 %vm148_vm0, %v91_v43  ;;  %2086 = vmatprep.mubr.msk.bf16.mxu1 %vm148_vm0, %v107_v44 }
  0x26   :  { %2055 = vmatmul.mubr.msk.bf16.gmra.mxu0 %vm148_vm0, %v92_v53  ;;  %2087 = vmatmul.mubr.msk.bf16.gmra.mxu1 %vm148_vm0, %v108_v54 }
  0x27   :  { %2058 = vmatprep.mubr.msk.bf16.mxu0 %vm148_vm0, %v93_v55  ;;  %2090 = vmatprep.mubr.msk.bf16.mxu1 %vm148_vm0, %v109_v56 }
  0x2e   :  { %2059 = vmatmul.mubr.msk.bf16.gmra.mxu0 %vm148_vm0, %v94_v1  ;;  %2091 = vmatmul.mubr.msk.bf16.gmra.mxu1 %vm148_vm0, %v110_v2 }
  0x2f   :  { %2062 = vmatprep.mubr.msk.bf16.mxu0 %vm148_vm0, %v95_v3  ;;  %2094 = vmatprep.mubr.msk.bf16.mxu1 %vm148_vm0, %v111_v4 }
  0x36   :  { %2063 = vmatmul.mubr.msk.bf16.gmra.mxu0 %vm148_vm0, %v96_v13  ;;  %2095 = vmatmul.mubr.msk.bf16.gmra.mxu1 %vm148_vm0, %v112_v14 }
  0x37   :  { %2066 = vmatprep.mubr.msk.bf16.mxu0 %vm148_vm0, %v97_v15  ;;  %2098 = vmatprep.mubr.msk.bf16.mxu1 %vm148_vm0, %v113_v16 }
  0x3e   :  { %2067 = vmatmul.mubr.msk.bf16.gmra.mxu0 %vm148_vm0, %v98_v25  ;;  %2099 = vmatmul.mubr.msk.bf16.gmra.mxu1 %vm148_vm0, %v114_v26 }
  0x3f   :  { %2070 = vmatprep.mubr.msk.bf16.mxu0 %vm148_vm0, %v99_v27  ;;  %2102 = vmatprep.mubr.msk.bf16.mxu1 %vm148_vm0, %v115_v28 }
  0x46   :  { %2071 = vmatmul.mubr.msk.bf16.gmra.mxu0 %vm148_vm0, %v100_v33  ;;  %2103 = vmatmul.mubr.msk.bf16.gmra.mxu1 %vm148_vm0, %v116_v34 }
  0xce   :  { %v2044_v36 = vpop.f32.mrf.mxu0  ;;  %v2076_v37 = vpop.f32.mrf.mxu1 }
  0xcf   :  { %v2514_v38 = vadd.f32 %v2044_v36, %v2511_v35  ;;  %v2517_v39 = vadd.f32 %v2076_v37, %v2511_v35 }
  0xd0   :  { %v279_v40 = vpop.f32.mrf.mxu0  ;;  %v407_v41 = vpop.f32.mrf.mxu1 }
  0xd1   :  { %v2520_v42 = vadd.f32 %v2511_v35, %v279_v40  ;;  %v637_v43 = vsel %vm534_vm1, %v2517_v39, 0.0  ;;  %v541_v44 = vsel %vm534_vm1, %v2514_v38, 0.0  ;;  %v2530_v49 = vadd.f32 %v2511_v35, %v407_v41 }
  0xd2   :  { %638 = vadd.xlane.f32.xlu0 %v637_v43  ;;  %v2077_v45 = vpop.f32.mrf.mxu1  ;;  %542 = vadd.xlane.f32.xlu1 %v541_v44  ;;  %v2045_v46 = vpop.f32.mrf.mxu0 }
  0xd3   :  { %v2527_v47 = vadd.f32 %v2045_v46, %v2511_v35  ;;  %v2533_v50 = vadd.f32 %v2077_v45, %v2511_v35  ;;  %v535_v52 = vsel %vm534_vm1, %v2520_v42, 0.0  ;;  %v631_v60 = vsel %vm534_vm1, %v2530_v49, 0.0 }
  0xd4   :  { %v282_v48 = vpop.f32.mrf.mxu0  ;;  %v410_v53 = vpop.f32.mrf.mxu1 }
  0xd5   :  { %v544_v51 = vsel %vm534_vm1, %v2527_v47, 0.0  ;;  %v2540_v57 = vadd.f32 %v2511_v35, %v282_v48  ;;  %v2543_v58 = vadd.f32 %v2511_v35, %v410_v53  ;;  %v640_v59 = vsel %vm534_vm1, %v2533_v50, 0.0 }
  0xd6   :  { %545 = vadd.xlane.f32.xlu1 %v544_v51  ;;  %v2048_v54 = vpop.f32.mrf.mxu0  ;;  %536 = vadd.xlane.f32.xlu0 %v535_v52  ;;  %v2080_v56 = vpop.f32.mrf.mxu1 }
  0xd7   :  { %v2550_v63 = vadd.f32 %v2048_v54, %v2511_v35  ;;  %v634_v1 = vsel %vm534_vm1, %v2543_v58, 0.0  ;;  %v538_v2 = vsel %vm534_vm1, %v2540_v57, 0.0  ;;  %v2560_v4 = vadd.f32 %v2080_v56, %v2511_v35 }
  0xd8   :  { %v295_v55 = vpop.f32.mrf.mxu0  ;;  %v423_v62 = vpop.f32.mrf.mxu1 }
  0xd9   :  { %v553_v7 = vsel %vm534_vm1, %v2550_v63, 0.0  ;;  %v2570_v10 = vadd.f32 %v2511_v35, %v295_v55  ;;  %v649_v13 = vsel %vm534_vm1, %v2560_v4, 0.0  ;;  %v2580_v17 = vadd.f32 %v2511_v35, %v423_v62 }
  0xda   :  { %641 = vadd.xlane.f32.xlu1 %v640_v59  ;;  %v2049_v61 = vpop.f32.mrf.mxu0  ;;  %632 = vadd.xlane.f32.xlu0 %v631_v60  ;;  %v2081_v3 = vpop.f32.mrf.mxu1 }
  0xdb   :  { %v2553_v0 = vadd.f32 %v2049_v61, %v2511_v35  ;;  %v2563_v5 = vadd.f32 %v2081_v3, %v2511_v35  ;;  %v547_v20 = vsel %vm534_vm1, %v2570_v10, 0.0  ;;  %v643_v26 = vsel %vm534_vm1, %v2580_v17, 0.0 }
  0xdc   :  { %v298_v8 = vpop.f32.mrf.mxu0  ;;  %v426_v14 = vpop.f32.mrf.mxu1 }
  0xdd   :  { %v556_v6 = vsel %vm534_vm1, %v2553_v0, 0.0  ;;  %v2573_v11 = vadd.f32 %v2511_v35, %v298_v8  ;;  %v652_v12 = vsel %vm534_vm1, %v2563_v5, 0.0  ;;  %v2583_v18 = vadd.f32 %v2511_v35, %v426_v14 }
  0xde   :  { %635 = vadd.xlane.f32.xlu1 %v634_v1  ;;  %539 = vadd.xlane.f32.xlu0 %v538_v2  ;;  %v2052_v9 = vpop.f32.mrf.mxu0  ;;  %v2084_v16 = vpop.f32.mrf.mxu1 }
  0xdf   :  { %v550_v19 = vsel %vm534_vm1, %v2573_v11, 0.0  ;;  %v2590_v23 = vadd.f32 %v2052_v9, %v2511_v35  ;;  %v646_v25 = vsel %vm534_vm1, %v2583_v18, 0.0  ;;  %v2600_v28 = vadd.f32 %v2084_v16, %v2511_v35 }
  0xe0   :  { %v311_v15 = vpop.f32.mrf.mxu0  ;;  %v439_v22 = vpop.f32.mrf.mxu1 }
  0xe1   :  { %v565_v31 = vsel %vm534_vm1, %v2590_v23, 0.0  ;;  %v2610_v34 = vadd.f32 %v2511_v35, %v311_v15  ;;  %v661_v40 = vsel %vm534_vm1, %v2600_v28, 0.0  ;;  %v2620_v45 = vadd.f32 %v2511_v35, %v439_v22 }
  0xe2   :  { %557 = vadd.xlane.f32.xlu1 %v556_v6  ;;  %554 = vadd.xlane.f32.xlu0 %v553_v7  ;;  %v2053_v21 = vpop.f32.mrf.mxu0  ;;  %v2085_v27 = vpop.f32.mrf.mxu1 }
  0xe3   :  { %v2593_v24 = vadd.f32 %v2053_v21, %v2511_v35  ;;  %v2603_v29 = vadd.f32 %v2085_v27, %v2511_v35  ;;  %v559_v51 = vsel %vm534_vm1, %v2610_v34, 0.0  ;;  %v655_v59 = vsel %vm534_vm1, %v2620_v45, 0.0 }
  0xe4   :  { %v314_v32 = vpop.f32.mrf.mxu0  ;;  %v442_v41 = vpop.f32.mrf.mxu1 }
  0xe5   :  { %v568_v30 = vsel %vm534_vm1, %v2593_v24, 0.0  ;;  %v2613_v36 = vadd.f32 %v2511_v35, %v314_v32  ;;  %v664_v37 = vsel %vm534_vm1, %v2603_v29, 0.0  ;;  %v2623_v46 = vadd.f32 %v2511_v35, %v442_v41 }
  0xe6   :  { %653 = vadd.xlane.f32.xlu1 %v652_v12  ;;  %650 = vadd.xlane.f32.xlu0 %v649_v13  ;;  %v2056_v33 = vpop.f32.mrf.mxu0  ;;  %v2088_v44 = vpop.f32.mrf.mxu1 }
  0xe7   :  { %v562_v48 = vsel %vm534_vm1, %v2613_v36, 0.0  ;;  %v2630_v54 = vadd.f32 %v2056_v33, %v2511_v35  ;;  %v658_v56 = vsel %vm534_vm1, %v2623_v46, 0.0  ;;  %v2640_v61 = vadd.f32 %v2088_v44, %v2511_v35 }
  0xe8   :  { %v327_v43 = vpop.f32.mrf.mxu0  ;;  %v455_v53 = vpop.f32.mrf.mxu1 }
  0xe9   :  { %v577_v2 = vsel %vm534_vm1, %v2630_v54, 0.0  ;;  %v2650_v7 = vadd.f32 %v2511_v35, %v327_v43  ;;  %v673_v12 = vsel %vm534_vm1, %v2640_v61, 0.0  ;;  %v2660_v16 = vadd.f32 %v2511_v35, %v455_v53 }
  0xea   :  { %551 = vadd.xlane.f32.xlu1 %v550_v19  ;;  %548 = vadd.xlane.f32.xlu0 %v547_v20  ;;  %v2057_v52 = vpop.f32.mrf.mxu0  ;;  %v2089_v60 = vpop.f32.mrf.mxu1 }
  0xeb   :  { %v2633_v55 = vadd.f32 %v2057_v52, %v2511_v35  ;;  %v2643_v62 = vadd.f32 %v2089_v60, %v2511_v35  ;;  %v571_v21 = vsel %vm534_vm1, %v2650_v7, 0.0 }
  0xec   :  { %v330_v3 = vpop.f32.mrf.mxu0  ;;  %v458_v13 = vpop.f32.mrf.mxu1 }
  0xed   :  { %v580_v1 = vsel %vm534_vm1, %v2633_v55, 0.0  ;;  %v2653_v8 = vadd.f32 %v2511_v35, %v330_v3  ;;  %v676_v9 = vsel %vm534_vm1, %v2643_v62, 0.0  ;;  %v2663_v19 = vadd.f32 %v2511_v35, %v458_v13 }
  0xee   :  { %647 = vadd.xlane.f32.xlu1 %v646_v25  ;;  %644 = vadd.xlane.f32.xlu0 %v643_v26  ;;  %v2060_v6 = vpop.f32.mrf.mxu0  ;;  %v2092_v15 = vpop.f32.mrf.mxu1 }
  0xef   :  { %v574_v20 = vsel %vm534_vm1, %v2653_v8, 0.0  ;;  %v2670_v26 = vadd.f32 %v2060_v6, %v2511_v35  ;;  %v2680_v33 = vadd.f32 %v2092_v15, %v2511_v35 }
  0xf0   :  { %v343_v14 = vpop.f32.mrf.mxu0  ;;  %v471_v25 = vpop.f32.mrf.mxu1 }
  0xf1   :  { %v589_v41 = vsel %vm534_vm1, %v2670_v26, 0.0  ;;  %v685_v53 = vsel %vm534_vm1, %v2680_v33, 0.0 }
  0xf2   :  { %569 = vadd.xlane.f32.xlu1 %v568_v30  ;;  %566 = vadd.xlane.f32.xlu0 %v565_v31  ;;  %v2061_v22 = vpop.f32.mrf.mxu0  ;;  %v670_v30 = vsel %vm534_vm1, %v2663_v19, 0.0  ;;  %v667_v31 = vsel %vm534_vm1, %v2660_v16, 0.0  ;;  %v2093_v32 = vpop.f32.mrf.mxu1 }
  0xf3   :  { %v2673_v27 = vadd.f32 %v2061_v22, %v2511_v35 }
  0xf4   :  { %v346_v43 = vpop.f32.mrf.mxu0 }
  0xf6   :  { %665 = vadd.xlane.f32.xlu1 %v664_v37  ;;  %662 = vadd.xlane.f32.xlu0 %v661_v40  ;;  %v2683_v37 = vadd.f32 %v2093_v32, %v2511_v35  ;;  %v592_v40 = vsel %vm534_vm1, %v2673_v27, 0.0  ;;  %v2064_v44 = vpop.f32.mrf.mxu0 }
  0xf7   :  { %v2710_v13 = vadd.f32 %v2064_v44, %v2511_v35 }
  0xf8   :  { %v688_v52 = vsel %vm534_vm1, %v2683_v37, 0.0 }
  0xfa   :  { %563 = vadd.xlane.f32.xlu1 %v562_v48  ;;  %560 = vadd.xlane.f32.xlu0 %v559_v51  ;;  %v2690_v48 = vadd.f32 %v2511_v35, %v343_v14  ;;  %v2693_v51 = vadd.f32 %v2511_v35, %v346_v43 }
  0xfc   :  { %v586_v3 = vsel %vm534_vm1, %v2693_v51, 0.0  ;;  %v583_v6 = vsel %vm534_vm1, %v2690_v48, 0.0 }
  0xfe   :  { %659 = vadd.xlane.f32.xlu1 %v658_v56  ;;  %656 = vadd.xlane.f32.xlu0 %v655_v59  ;;  %v474_v56 = vpop.f32.mrf.mxu1  ;;  %v359_v59 = vpop.f32.mrf.mxu0 }
 0x100   :  { %v2096_v60 = vpop.f32.mrf.mxu1 }
 0x101   :  { %v2720_v22 = vadd.f32 %v2096_v60, %v2511_v35 }
 0x102   :  { %581 = vadd.xlane.f32.xlu1 %v580_v1  ;;  %578 = vadd.xlane.f32.xlu0 %v577_v2  ;;  %v2700_v1 = vadd.f32 %v2511_v35, %v471_v25  ;;  %v2703_v2 = vadd.f32 %v2511_v35, %v474_v56 }
 0x104   :  { %v682_v15 = vsel %vm534_vm1, %v2703_v2, 0.0 }
 0x106   :  { %677 = vadd.xlane.f32.xlu1 %v676_v9  ;;  %674 = vadd.xlane.f32.xlu0 %v673_v12  ;;  %v2065_v9 = vpop.f32.mrf.mxu0  ;;  %v487_v12 = vpop.f32.mrf.mxu1 }
 0x107   :  { %v2713_v14 = vadd.f32 %v2065_v9, %v2511_v35 }
 0x108   :  { %v362_v32 = vpop.f32.mrf.mxu0 }
 0x109   :  { %v2733_v43 = vadd.f32 %v2511_v35, %v362_v32 }
 0x10a   :  { %575 = vadd.xlane.f32.xlu1 %v574_v20  ;;  %572 = vadd.xlane.f32.xlu0 %v571_v21  ;;  %v679_v20 = vsel %vm534_vm1, %v2700_v1, 0.0  ;;  %v2097_v21 = vpop.f32.mrf.mxu1 }
 0x10b   :  { %v2723_v25 = vadd.f32 %v2097_v21, %v2511_v35 }
 0x10d   :  { %v700_v44 = vsel %vm534_vm1, %v2723_v25, 0.0 }
 0x10e   :  { %671 = vadd.xlane.f32.xlu1 %v670_v30  ;;  %668 = vadd.xlane.f32.xlu0 %v667_v31  ;;  %v604_v30 = vsel %vm534_vm1, %v2713_v14, 0.0  ;;  %v601_v31 = vsel %vm534_vm1, %v2710_v13, 0.0 }
 0x112   :  { %593 = vadd.xlane.f32.xlu1 %v592_v40  ;;  %590 = vadd.xlane.f32.xlu0 %v589_v41  ;;  %v2068_v40 = vpop.f32.mrf.mxu0  ;;  %v2730_v41 = vadd.f32 %v2511_v35, %v359_v59 }
 0x113   :  { %v2750_v21 = vadd.f32 %v2068_v40, %v2511_v35 }
 0x114   :  { %v375_v56 = vpop.f32.mrf.mxu0  ;;  %v595_v9 = vsel %vm534_vm1, %v2730_v41, 0.0 }
 0x115   :  { %3724 = vst [vmem:[#allocation2_spill] sm:$0xff] %v2750_v21 }
 0x116   :  { %689 = vadd.xlane.f32.xlu1 %v688_v52  ;;  %686 = vadd.xlane.f32.xlu0 %v685_v53  ;;  %v697_v52 = vsel %vm534_vm1, %v2720_v22, 0.0  ;;  %v490_v53 = vpop.f32.mrf.mxu1 }
 0x117   :  { %v2743_v59 = vadd.f32 %v2511_v35, %v490_v53  ;;  %v613_v53 = vsel %vm534_vm1, %v2750_v21, 0.0 }
 0x118   :  { %v2100_v60 = vpop.f32.mrf.mxu1 }
 0x11a   :  { %587 = vadd.xlane.f32.xlu1 %v586_v3  ;;  %584 = vadd.xlane.f32.xlu0 %v583_v6  ;;  %v2740_v3 = vadd.f32 %v2511_v35, %v487_v12  ;;  %v598_v6 = vsel %vm534_vm1, %v2733_v43, 0.0  ;;  %v694_v12 = vsel %vm534_vm1, %v2743_v59, 0.0 }
 0x11e   :  { %683 = vadd.xlane.f32.xlu1 %v682_v15  ;;  %680 = vadd.xlane.f32.xlu0 %v679_v20  ;;  %v2069_v15 = vpop.f32.mrf.mxu0  ;;  %v503_v20 = vpop.f32.mrf.mxu1 }
 0x120   :  { %v2101_v32 = vpop.f32.mrf.mxu1 }
 0x122   :  { %605 = vadd.xlane.f32.xlu1 %v604_v30  ;;  %602 = vadd.xlane.f32.xlu0 %v601_v31  ;;  %v2753_v30 = vadd.f32 %v2069_v15, %v2511_v35  ;;  %v691_v31 = vsel %vm534_vm1, %v2740_v3, 0.0  ;;  %v2770_v15 = vadd.f32 %v2511_v35, %v375_v56 }
 0x124   :  { %3725 = vst [vmem:[#allocation3_spill] sm:$0xff] %v2753_v30  ;;  %v616_v40 = vsel %vm534_vm1, %v2753_v30, 0.0  ;;  %3728 = vst [vmem:[#allocation6_spill] sm:$0xff] %v2770_v15 }
 0x126   :  { %701 = vadd.xlane.f32.xlu1 %v700_v44  ;;  %698 = vadd.xlane.f32.xlu0 %v697_v52  ;;  %v2760_v44 = vadd.f32 %v2100_v60, %v2511_v35  ;;  %v2763_v52 = vadd.f32 %v2101_v32, %v2511_v35  ;;  %v506_v32 = vpop.f32.mrf.mxu1 }
 0x127   :  { %v2783_v56 = vadd.f32 %v2511_v35, %v506_v32 }
 0x128   :  { %3726 = vst [vmem:[#allocation4_spill] sm:$0xff] %v2760_v44  ;;  %3727 = vst [vmem:[#allocation5_spill] sm:$0xff] %v2763_v52  ;;  %v712_v60 = vsel %vm534_vm1, %v2763_v52, 0.0  ;;  %v2104_v30 = vpop.f32.mrf.mxu1 }
 0x12a   :  { %599 = vadd.xlane.f32.xlu1 %v598_v6  ;;  %596 = vadd.xlane.f32.xlu0 %v595_v9  ;;  %v378_v6 = vpop.f32.mrf.mxu0  ;;  %v519_v52 = vpop.f32.mrf.mxu1 }
 0x12c   :  { %v2072_v9 = vpop.f32.mrf.mxu0 }
 0x12e   :  { %695 = vadd.xlane.f32.xlu1 %v694_v12  ;;  %692 = vadd.xlane.f32.xlu0 %v691_v31  ;;  %v2773_v12 = vadd.f32 %v2511_v35, %v378_v6  ;;  %v709_v31 = vsel %vm534_vm1, %v2760_v44, 0.0  ;;  %v391_v21 = vpop.f32.mrf.mxu0  ;;  %v607_v6 = vsel %vm534_vm1, %v2770_v15, 0.0 }
 0x130   :  { %3729 = vst [vmem:[#allocation7_spill] sm:$0xff] %v2773_v12  ;;  %v2073_v44 = vpop.f32.mrf.mxu0 }
 0x132   :  { %617 = vadd.xlane.f32.xlu1 %v616_v40  ;;  %614 = vadd.xlane.f32.xlu0 %v613_v53  ;;  %v2780_v40 = vadd.f32 %v2511_v35, %v503_v20  ;;  %v610_v53 = vsel %vm534_vm1, %v2773_v12, 0.0  ;;  %v706_v20 = vsel %vm534_vm1, %v2783_v56, 0.0  ;;  %v2105_v12 = vpop.f32.mrf.mxu1  ;;  %v394_v15 = vpop.f32.mrf.mxu0 }
 0x134   :  { %3730 = vst [vmem:[#allocation8_spill] sm:$0xff] %v2780_v40  ;;  %v703_v32 = vsel %vm534_vm1, %v2780_v40, 0.0  ;;  %v2810_v40 = vadd.f32 %v2511_v35, %v391_v21 }
 0x136   :  { %713 = vadd.xlane.f32.xlu1 %v712_v60  ;;  %710 = vadd.xlane.f32.xlu0 %v709_v31  ;;  %v2790_v60 = vadd.f32 %v2072_v9, %v2511_v35  ;;  %v2793_v31 = vadd.f32 %v2073_v44, %v2511_v35  ;;  %3734 = vst [vmem:[#allocation12_spill] sm:$0xff] %v2810_v40 }
 0x138   :  { %3731 = vst [vmem:[#allocation9_spill] sm:$0xff] %v2790_v60  ;;  %v628_v9 = vsel %vm534_vm1, %v2793_v31, 0.0  ;;  %v625_v44 = vsel %vm534_vm1, %v2790_v60, 0.0  ;;  %v2820_v60 = vadd.f32 %v2511_v35, %v519_v52 }
 0x13a   :  { %611 = vadd.xlane.f32.xlu1 %v610_v53  ;;  %608 = vadd.xlane.f32.xlu0 %v607_v6  ;;  %v2800_v53 = vadd.f32 %v2104_v30, %v2511_v35  ;;  %v2803_v6 = vadd.f32 %v2105_v12, %v2511_v35 }
 0x13c   :  { %3732 = vst [vmem:[#allocation10_spill] sm:$0xff] %v2800_v53  ;;  %3733 = vst [vmem:[#allocation11_spill] sm:$0xff] %v2803_v6  ;;  %v724_v30 = vsel %vm534_vm1, %v2803_v6, 0.0  ;;  %v721_v12 = vsel %vm534_vm1, %v2800_v53, 0.0 }
 0x13e   :  { %707 = vadd.xlane.f32.xlu1 %v706_v20  ;;  %704 = vadd.xlane.f32.xlu0 %v703_v32  ;;  %v2813_v20 = vadd.f32 %v2511_v35, %v394_v15  ;;  %v522_v32 = vpop.f32.mrf.mxu1  ;;  %v619_v15 = vsel %vm534_vm1, %v2810_v40, 0.0 }
 0x140   :  { %3735 = vst [vmem:[#allocation13_spill] sm:$0xff] %v2813_v20  ;;  %v622_v21 = vsel %vm534_vm1, %v2813_v20, 0.0 }
 0x142   :  { %629 = vadd.xlane.f32.xlu1 %v628_v9  ;;  %626 = vadd.xlane.f32.xlu0 %v625_v44  ;;  %v2823_v9 = vadd.f32 %v2511_v35, %v522_v32 }
 0x144   :  { %3736 = vst [vmem:[#allocation14_spill] sm:$0xff] %v2823_v9  ;;  %v718_v44 = vsel %vm534_vm1, %v2823_v9, 0.0 }
 0x146   :  { %725 = vadd.xlane.f32.xlu1 %v724_v30  ;;  %722 = vadd.xlane.f32.xlu0 %v721_v12  ;;  %v715_v30 = vsel %vm534_vm1, %v2820_v60, 0.0 }
 0x14a   :  { %623 = vadd.xlane.f32.xlu1 %v622_v21  ;;  %620 = vadd.xlane.f32.xlu0 %v619_v15 }
 0x14e   :  { %719 = vadd.xlane.f32.xlu1 %v718_v44  ;;  %716 = vadd.xlane.f32.xlu0 %v715_v30 }
 0x15b   :  { %v639_v52 = vpop.xlane.xlu0 %638  ;;  %v543_v12 = vpop.xlane.xlu1 %542 }
 0x15c   :  { %v762_v35 = vmul.f32 0.0625, %v639_v52  ;;  %v730_v32 = vmul.f32 0.0625, %v543_v12 }
 0x15e   :  { %v2834_v53 = vsub.f32 %v2517_v39, %v762_v35  ;;  %v2837_v6 = vsub.f32 %v2514_v38, %v730_v32 }
 0x15f   :  { %v546_v21 = vpop.xlane.xlu1 %545  ;;  %v537_v15 = vpop.xlane.xlu0 %536 }
 0x160   :  { %3737 = vst [vmem:[#allocation15_spill] sm:$0xff] %v2834_v53  ;;  %v731_v40 = vmul.f32 0.0625, %v546_v21  ;;  %v728_v20 = vmul.f32 0.0625, %v537_v15  ;;  %v858_v9 = vmul.f32 %v2837_v6, %v2837_v6  ;;  %v890_v44 = vmul.f32 %v2834_v53, %v2834_v53 }
 0x162   :  { %v2844_v30 = vsub.f32 %v2527_v47, %v731_v40  ;;  %v2847_v52 = vsub.f32 %v2520_v42, %v728_v20  ;;  %v926_v39 = vsel %vm534_vm1, %v858_v9, 0.0  ;;  %v1022_v15 = vsel %vm534_vm1, %v890_v44, 0.0 }
 0x163   :  { %v642_v38 = vpop.xlane.xlu1 %641  ;;  %927 = vadd.xlane.f32.xlu0 %v926_v39  ;;  %v633_v12 = vpop.xlane.xlu0 %632 }
 0x164   :  { %v763_v35 = vmul.f32 0.0625, %v642_v38  ;;  %v760_v32 = vmul.f32 0.0625, %v633_v12  ;;  %v859_v21 = vmul.f32 %v2844_v30, %v2844_v30  ;;  %v856_v40 = vmul.f32 %v2847_v52, %v2847_v52 }
 0x166   :  { %v2854_v53 = vsub.f32 %v2533_v50, %v763_v35  ;;  %v2857_v47 = vsub.f32 %v2530_v49, %v760_v32  ;;  %v929_v42 = vsel %vm534_vm1, %v859_v21, 0.0  ;;  %v920_v32 = vsel %vm534_vm1, %v856_v40, 0.0 }
 0x167   :  { %v636_v20 = vpop.xlane.xlu1 %635  ;;  %930 = vadd.xlane.f32.xlu1 %v929_v42  ;;  %1023 = vadd.xlane.f32.xlu0 %v1022_v15  ;;  %v540_v9 = vpop.xlane.xlu0 %539 }
 0x168   :  { %3738 = vst [vmem:[#allocation16_spill] sm:$0xff] %v2857_v47  ;;  %v761_v39 = vmul.f32 0.0625, %v636_v20  ;;  %v729_v38 = vmul.f32 0.0625, %v540_v9  ;;  %v891_v44 = vmul.f32 %v2854_v53, %v2854_v53  ;;  %v888_v50 = vmul.f32 %v2857_v47, %v2857_v47 }
 0x16a   :  { %v2867_v49 = vsub.f32 %v2543_v58, %v761_v39  ;;  %v2870_v12 = vsub.f32 %v2540_v57, %v729_v38  ;;  %v1025_v35 = vsel %vm534_vm1, %v891_v44, 0.0  ;;  %v1016_v47 = vsel %vm534_vm1, %v888_v50, 0.0 }
 0x16b   :  { %v558_v21 = vpop.xlane.xlu1 %557  ;;  %1026 = vadd.xlane.f32.xlu1 %v1025_v35  ;;  %921 = vadd.xlane.f32.xlu0 %v920_v32  ;;  %v555_v15 = vpop.xlane.xlu0 %554 }
 0x16c   :  { %v735_v42 = vmul.f32 0.0625, %v558_v21  ;;  %v734_v20 = vmul.f32 0.0625, %v555_v15  ;;  %v857_v9 = vmul.f32 %v2870_v12, %v2870_v12  ;;  %v889_v40 = vmul.f32 %v2867_v49, %v2867_v49 }
 0x16e   :  { %v2878_v58 = vsub.f32 %v2553_v0, %v735_v42  ;;  %v2881_v57 = vsub.f32 %v2550_v63, %v734_v20  ;;  %v923_v39 = vsel %vm534_vm1, %v857_v9, 0.0  ;;  %v1019_v15 = vsel %vm534_vm1, %v889_v40, 0.0 }
 0x16f   :  { %v654_v38 = vpop.xlane.xlu1 %653  ;;  %1017 = vadd.xlane.f32.xlu0 %v1016_v47  ;;  %924 = vadd.xlane.f32.xlu1 %v923_v39  ;;  %v651_v44 = vpop.xlane.xlu0 %650 }
 0x170   :  { %v767_v35 = vmul.f32 0.0625, %v654_v38  ;;  %v766_v32 = vmul.f32 0.0625, %v651_v44  ;;  %v862_v50 = vmul.f32 %v2881_v57, %v2881_v57  ;;  %v863_v0 = vmul.f32 %v2878_v58, %v2878_v58 }
 0x172   :  { %v2891_v63 = vsub.f32 %v2563_v5, %v767_v35  ;;  %v2894_v21 = vsub.f32 %v2560_v4, %v766_v32  ;;  %v938_v47 = vsel %vm534_vm1, %v862_v50, 0.0  ;;  %v941_v44 = vsel %vm534_vm1, %v863_v0, 0.0 }
 0x173   :  { %v552_v42 = vpop.xlane.xlu1 %551  ;;  %1020 = vadd.xlane.f32.xlu1 %v1019_v15  ;;  %939 = vadd.xlane.f32.xlu0 %v938_v47  ;;  %v549_v20 = vpop.xlane.xlu0 %548 }
 0x174   :  { %v733_v9 = vmul.f32 0.0625, %v552_v42  ;;  %v732_v39 = vmul.f32 0.0625, %v549_v20  ;;  %v894_v38 = vmul.f32 %v2894_v21, %v2894_v21  ;;  %v895_v35 = vmul.f32 %v2891_v63, %v2891_v63 }
 0x176   :  { %v2902_v5 = vsub.f32 %v2573_v11, %v733_v9  ;;  %v2905_v4 = vsub.f32 %v2570_v10, %v732_v39  ;;  %v1034_v40 = vsel %vm534_vm1, %v894_v38, 0.0  ;;  %v1037_v20 = vsel %vm534_vm1, %v895_v35, 0.0 }
 0x177   :  { %v648_v32 = vpop.xlane.xlu1 %647  ;;  %942 = vadd.xlane.f32.xlu1 %v941_v44  ;;  %1035 = vadd.xlane.f32.xlu0 %v1034_v40  ;;  %v645_v50 = vpop.xlane.xlu0 %644 }
 0x178   :  { %v765_v15 = vmul.f32 0.0625, %v648_v32  ;;  %v764_v47 = vmul.f32 0.0625, %v645_v50  ;;  %v860_v0 = vmul.f32 %v2905_v4, %v2905_v4  ;;  %v861_v11 = vmul.f32 %v2902_v5, %v2902_v5 }
 0x17a   :  { %v2915_v10 = vsub.f32 %v2583_v18, %v765_v15  ;;  %v2918_v42 = vsub.f32 %v2580_v17, %v764_v47  ;;  %v932_v9 = vsel %vm534_vm1, %v860_v0, 0.0  ;;  %v935_v50 = vsel %vm534_vm1, %v861_v11, 0.0 }
 0x17b   :  { %v570_v39 = vpop.xlane.xlu1 %569  ;;  %1038 = vadd.xlane.f32.xlu1 %v1037_v20  ;;  %933 = vadd.xlane.f32.xlu0 %v932_v9  ;;  %v567_v38 = vpop.xlane.xlu0 %566 }
 0x17c   :  { %v739_v44 = vmul.f32 0.0625, %v570_v39  ;;  %v738_v40 = vmul.f32 0.0625, %v567_v38  ;;  %v892_v32 = vmul.f32 %v2918_v42, %v2918_v42  ;;  %v893_v15 = vmul.f32 %v2915_v10, %v2915_v10 }
 0x17e   :  { %v2926_v18 = vsub.f32 %v2593_v24, %v739_v44  ;;  %v2929_v17 = vsub.f32 %v2590_v23, %v738_v40  ;;  %v1028_v35 = vsel %vm534_vm1, %v892_v32, 0.0  ;;  %v1031_v38 = vsel %vm534_vm1, %v893_v15, 0.0 }
 0x17f   :  { %v666_v47 = vpop.xlane.xlu1 %665  ;;  %936 = vadd.xlane.f32.xlu1 %v935_v50  ;;  %1029 = vadd.xlane.f32.xlu0 %v1028_v35  ;;  %v663_v0 = vpop.xlane.xlu0 %662 }
 0x180   :  { %v771_v20 = vmul.f32 0.0625, %v666_v47  ;;  %v770_v9 = vmul.f32 0.0625, %v663_v0  ;;  %v866_v11 = vmul.f32 %v2929_v17, %v2929_v17  ;;  %v867_v24 = vmul.f32 %v2926_v18, %v2926_v18 }
 0x182   :  { %v2939_v23 = vsub.f32 %v2603_v29, %v771_v20  ;;  %v2942_v39 = vsub.f32 %v2600_v28, %v770_v9  ;;  %v950_v44 = vsel %vm534_vm1, %v866_v11, 0.0  ;;  %v953_v0 = vsel %vm534_vm1, %v867_v24, 0.0 }
 0x183   :  { %v564_v40 = vpop.xlane.xlu1 %563  ;;  %1032 = vadd.xlane.f32.xlu1 %v1031_v38  ;;  %951 = vadd.xlane.f32.xlu0 %v950_v44  ;;  %v561_v32 = vpop.xlane.xlu0 %560 }
 0x184   :  { %v737_v50 = vmul.f32 0.0625, %v564_v40  ;;  %v736_v35 = vmul.f32 0.0625, %v561_v32  ;;  %v898_v47 = vmul.f32 %v2942_v39, %v2942_v39  ;;  %v899_v20 = vmul.f32 %v2939_v23, %v2939_v23 }
 0x186   :  { %v2950_v29 = vsub.f32 %v2613_v36, %v737_v50  ;;  %v2953_v28 = vsub.f32 %v2610_v34, %v736_v35  ;;  %v1046_v15 = vsel %vm534_vm1, %v898_v47, 0.0  ;;  %v1049_v32 = vsel %vm534_vm1, %v899_v20, 0.0 }
 0x187   :  { %v660_v9 = vpop.xlane.xlu1 %659  ;;  %954 = vadd.xlane.f32.xlu1 %v953_v0  ;;  %1047 = vadd.xlane.f32.xlu0 %v1046_v15  ;;  %v657_v11 = vpop.xlane.xlu0 %656 }
 0x188   :  { %v769_v38 = vmul.f32 0.0625, %v660_v9  ;;  %v768_v44 = vmul.f32 0.0625, %v657_v11  ;;  %v864_v24 = vmul.f32 %v2953_v28, %v2953_v28  ;;  %v865_v36 = vmul.f32 %v2950_v29, %v2950_v29 }
 0x18a   :  { %v2963_v34 = vsub.f32 %v2623_v46, %v769_v38  ;;  %v2966_v40 = vsub.f32 %v2620_v45, %v768_v44  ;;  %v944_v50 = vsel %vm534_vm1, %v864_v24, 0.0  ;;  %v947_v11 = vsel %vm534_vm1, %v865_v36, 0.0 }
 0x18b   :  { %v582_v35 = vpop.xlane.xlu1 %581  ;;  %1050 = vadd.xlane.f32.xlu1 %v1049_v32  ;;  %945 = vadd.xlane.f32.xlu0 %v944_v50  ;;  %v579_v47 = vpop.xlane.xlu0 %578 }
 0x18c   :  { %v743_v0 = vmul.f32 0.0625, %v582_v35  ;;  %v742_v15 = vmul.f32 0.0625, %v579_v47  ;;  %v896_v9 = vmul.f32 %v2966_v40, %v2966_v40  ;;  %v897_v38 = vmul.f32 %v2963_v34, %v2963_v34 }
 0x18e   :  { %v2974_v46 = vsub.f32 %v2633_v55, %v743_v0  ;;  %v2977_v45 = vsub.f32 %v2630_v54, %v742_v15  ;;  %v1040_v20 = vsel %vm534_vm1, %v896_v9, 0.0  ;;  %v1043_v47 = vsel %vm534_vm1, %v897_v38, 0.0 }
 0x18f   :  { %v678_v44 = vpop.xlane.xlu1 %677  ;;  %948 = vadd.xlane.f32.xlu1 %v947_v11  ;;  %1041 = vadd.xlane.f32.xlu0 %v1040_v20  ;;  %v675_v24 = vpop.xlane.xlu0 %674 }
 0x190   :  { %v775_v32 = vmul.f32 0.0625, %v678_v44  ;;  %v774_v50 = vmul.f32 0.0625, %v675_v24  ;;  %v870_v36 = vmul.f32 %v2977_v45, %v2977_v45  ;;  %v871_v55 = vmul.f32 %v2974_v46, %v2974_v46 }
 0x192   :  { %v2987_v54 = vsub.f32 %v2643_v62, %v775_v32  ;;  %v2990_v35 = vsub.f32 %v2640_v61, %v774_v50  ;;  %v962_v0 = vsel %vm534_vm1, %v870_v36, 0.0  ;;  %v965_v24 = vsel %vm534_vm1, %v871_v55, 0.0 }
 0x193   :  { %v576_v15 = vpop.xlane.xlu1 %575  ;;  %1044 = vadd.xlane.f32.xlu1 %v1043_v47  ;;  %963 = vadd.xlane.f32.xlu0 %v962_v0  ;;  %v573_v9 = vpop.xlane.xlu0 %572 }
 0x194   :  { %v741_v11 = vmul.f32 0.0625, %v576_v15  ;;  %v740_v20 = vmul.f32 0.0625, %v573_v9  ;;  %v902_v44 = vmul.f32 %v2990_v35, %v2990_v35  ;;  %v903_v32 = vmul.f32 %v2987_v54, %v2987_v54 }
 0x196   :  { %v2998_v62 = vsub.f32 %v2653_v8, %v741_v11  ;;  %v3001_v61 = vsub.f32 %v2650_v7, %v740_v20  ;;  %v1058_v38 = vsel %vm534_vm1, %v902_v44, 0.0  ;;  %v1061_v9 = vsel %vm534_vm1, %v903_v32, 0.0 }
 0x197   :  { %v672_v50 = vpop.xlane.xlu1 %671  ;;  %966 = vadd.xlane.f32.xlu1 %v965_v24  ;;  %1059 = vadd.xlane.f32.xlu0 %v1058_v38  ;;  %v669_v36 = vpop.xlane.xlu0 %668 }
 0x198   :  { %v773_v47 = vmul.f32 0.0625, %v672_v50  ;;  %v772_v0 = vmul.f32 0.0625, %v669_v36  ;;  %v868_v55 = vmul.f32 %v3001_v61, %v3001_v61  ;;  %v869_v8 = vmul.f32 %v2998_v62, %v2998_v62 }
 0x19a   :  { %v3011_v7 = vsub.f32 %v2663_v19, %v773_v47  ;;  %v3014_v15 = vsub.f32 %v2660_v16, %v772_v0  ;;  %v956_v11 = vsel %vm534_vm1, %v868_v55, 0.0  ;;  %v959_v36 = vsel %vm534_vm1, %v869_v8, 0.0 }
 0x19b   :  { %v594_v20 = vpop.xlane.xlu1 %593  ;;  %1062 = vadd.xlane.f32.xlu1 %v1061_v9  ;;  %957 = vadd.xlane.f32.xlu0 %v956_v11  ;;  %v591_v44 = vpop.xlane.xlu0 %590 }
 0x19c   :  { %v747_v24 = vmul.f32 0.0625, %v594_v20  ;;  %v746_v38 = vmul.f32 0.0625, %v591_v44  ;;  %v900_v50 = vmul.f32 %v3014_v15, %v3014_v15  ;;  %v901_v47 = vmul.f32 %v3011_v7, %v3011_v7 }
 0x19e   :  { %v3022_v19 = vsub.f32 %v2673_v27, %v747_v24  ;;  %v3025_v16 = vsub.f32 %v2670_v26, %v746_v38  ;;  %v1052_v32 = vsel %vm534_vm1, %v900_v50, 0.0  ;;  %v1055_v44 = vsel %vm534_vm1, %v901_v47, 0.0 }
 0x19f   :  { %v690_v0 = vpop.xlane.xlu1 %689  ;;  %960 = vadd.xlane.f32.xlu1 %v959_v36  ;;  %1053 = vadd.xlane.f32.xlu0 %v1052_v32  ;;  %v687_v55 = vpop.xlane.xlu0 %686 }
 0x1a0   :  { %v779_v9 = vmul.f32 0.0625, %v690_v0  ;;  %v778_v11 = vmul.f32 0.0625, %v687_v55  ;;  %v874_v8 = vmul.f32 %v3025_v16, %v3025_v16  ;;  %v875_v27 = vmul.f32 %v3022_v19, %v3022_v19 }
 0x1a2   :  { %v3035_v26 = vsub.f32 %v2683_v37, %v779_v9  ;;  %v3038_v20 = vsub.f32 %v2680_v33, %v778_v11  ;;  %v974_v24 = vsel %vm534_vm1, %v874_v8, 0.0  ;;  %v977_v55 = vsel %vm534_vm1, %v875_v27, 0.0 }
 0x1a3   :  { %v588_v38 = vpop.xlane.xlu1 %587  ;;  %1056 = vadd.xlane.f32.xlu1 %v1055_v44  ;;  %975 = vadd.xlane.f32.xlu0 %v974_v24  ;;  %v585_v50 = vpop.xlane.xlu0 %584 }
 0x1a4   :  { %v745_v36 = vmul.f32 0.0625, %v588_v38  ;;  %v744_v32 = vmul.f32 0.0625, %v585_v50  ;;  %v906_v0 = vmul.f32 %v3038_v20, %v3038_v20  ;;  %v907_v9 = vmul.f32 %v3035_v26, %v3035_v26 }
 0x1a6   :  { %v3046_v37 = vsub.f32 %v2693_v51, %v745_v36  ;;  %v3049_v33 = vsub.f32 %v2690_v48, %v744_v32  ;;  %v1070_v47 = vsel %vm534_vm1, %v906_v0, 0.0  ;;  %v1073_v50 = vsel %vm534_vm1, %v907_v9, 0.0 }
 0x1a7   :  { %v684_v11 = vpop.xlane.xlu1 %683  ;;  %978 = vadd.xlane.f32.xlu1 %v977_v55  ;;  %1071 = vadd.xlane.f32.xlu0 %v1070_v47  ;;  %v681_v8 = vpop.xlane.xlu0 %680 }
 0x1a8   :  { %v777_v44 = vmul.f32 0.0625, %v684_v11  ;;  %v776_v24 = vmul.f32 0.0625, %v681_v8  ;;  %v872_v27 = vmul.f32 %v3049_v33, %v3049_v33  ;;  %v873_v51 = vmul.f32 %v3046_v37, %v3046_v37 }
 0x1aa   :  { %v3059_v48 = vsub.f32 %v2703_v2, %v777_v44  ;;  %v3062_v38 = vsub.f32 %v2700_v1, %v776_v24  ;;  %v968_v36 = vsel %vm534_vm1, %v872_v27, 0.0  ;;  %v971_v8 = vsel %vm534_vm1, %v873_v51, 0.0 }
 0x1ab   :  { %v606_v32 = vpop.xlane.xlu1 %605  ;;  %1074 = vadd.xlane.f32.xlu1 %v1073_v50  ;;  %969 = vadd.xlane.f32.xlu0 %v968_v36  ;;  %v603_v0 = vpop.xlane.xlu0 %602 }
 0x1ac   :  { %v751_v55 = vmul.f32 0.0625, %v606_v32  ;;  %v750_v47 = vmul.f32 0.0625, %v603_v0  ;;  %v904_v11 = vmul.f32 %v3062_v38, %v3062_v38  ;;  %v905_v44 = vmul.f32 %v3059_v48, %v3059_v48 }
 0x1ae   :  { %v3070_v2 = vsub.f32 %v2713_v14, %v751_v55  ;;  %v3073_v1 = vsub.f32 %v2710_v13, %v750_v47  ;;  %v1064_v9 = vsel %vm534_vm1, %v904_v11, 0.0  ;;  %v1067_v0 = vsel %vm534_vm1, %v905_v44, 0.0 }
 0x1af   :  { %v702_v24 = vpop.xlane.xlu1 %701  ;;  %972 = vadd.xlane.f32.xlu1 %v971_v8  ;;  %1065 = vadd.xlane.f32.xlu0 %v1064_v9  ;;  %v699_v27 = vpop.xlane.xlu0 %698 }
 0x1b0   :  { %v783_v50 = vmul.f32 0.0625, %v702_v24  ;;  %v782_v36 = vmul.f32 0.0625, %v699_v27  ;;  %v878_v51 = vmul.f32 %v3073_v1, %v3073_v1  ;;  %v879_v14 = vmul.f32 %v3070_v2, %v3070_v2 }
 0x1b2   :  { %v3083_v13 = vsub.f32 %v2723_v25, %v783_v50  ;;  %v3086_v32 = vsub.f32 %v2720_v22, %v782_v36  ;;  %v986_v55 = vsel %vm534_vm1, %v878_v51, 0.0  ;;  %v989_v27 = vsel %vm534_vm1, %v879_v14, 0.0 }
 0x1b3   :  { %v600_v47 = vpop.xlane.xlu1 %599  ;;  %1068 = vadd.xlane.f32.xlu1 %v1067_v0  ;;  %987 = vadd.xlane.f32.xlu0 %v986_v55  ;;  %v597_v11 = vpop.xlane.xlu0 %596 }
 0x1b4   :  { %v749_v8 = vmul.f32 0.0625, %v600_v47  ;;  %v748_v9 = vmul.f32 0.0625, %v597_v11  ;;  %v910_v24 = vmul.f32 %v3086_v32, %v3086_v32  ;;  %v911_v50 = vmul.f32 %v3083_v13, %v3083_v13 }
 0x1b6   :  { %v3094_v25 = vsub.f32 %v2733_v43, %v749_v8  ;;  %v3097_v22 = vsub.f32 %v2730_v41, %v748_v9  ;;  %v1082_v44 = vsel %vm534_vm1, %v910_v24, 0.0  ;;  %v1085_v11 = vsel %vm534_vm1, %v911_v50, 0.0 }
 0x1b7   :  { %v696_v36 = vpop.xlane.xlu1 %695  ;;  %990 = vadd.xlane.f32.xlu1 %v989_v27  ;;  %1083 = vadd.xlane.f32.xlu0 %v1082_v44  ;;  %v693_v51 = vpop.xlane.xlu0 %692 }
 0x1b8   :  { %3739 = vst [vmem:[#allocation17_spill] sm:$0xff] %v3094_v25  ;;  %v781_v0 = vmul.f32 0.0625, %v696_v36  ;;  %v780_v55 = vmul.f32 0.0625, %v693_v51  ;;  %v876_v14 = vmul.f32 %v3097_v22, %v3097_v22  ;;  %v877_v43 = vmul.f32 %v3094_v25, %v3094_v25 }
 0x1ba   :  { %v3107_v41 = vsub.f32 %v2743_v59, %v781_v0  ;;  %v3110_v47 = vsub.f32 %v2740_v3, %v780_v55  ;;  %v980_v8 = vsel %vm534_vm1, %v876_v14, 0.0  ;;  %v983_v51 = vsel %vm534_vm1, %v877_v43, 0.0  ;;  %v3742_v59 = vld [vmem:[#allocation3_spill] sm:$0xff]  ;;  %v3744_v3 = vld [vmem:[#allocation2_spill] sm:$0xff] }
 0x1bb   :  { %v618_v9 = vpop.xlane.xlu1 %617  ;;  %1086 = vadd.xlane.f32.xlu1 %v1085_v11  ;;  %981 = vadd.xlane.f32.xlu0 %v980_v8  ;;  %v615_v24 = vpop.xlane.xlu0 %614 }
 0x1bc   :  { %3740 = vst [vmem:[#allocation18_spill] sm:$0xff] %v3107_v41  ;;  %3741 = vst [vmem:[#allocation19_spill] sm:$0xff] %v3110_v47  ;;  %v755_v27 = vmul.f32 0.0625, %v618_v9  ;;  %v754_v44 = vmul.f32 0.0625, %v615_v24  ;;  %v908_v36 = vmul.f32 %v3110_v47, %v3110_v47  ;;  %v909_v14 = vmul.f32 %v3107_v41, %v3107_v41 }
 0x1be   :  { %v3118_v0 = vsub.f32 %v3742_v59, %v755_v27  ;;  %v3121_v55 = vsub.f32 %v3744_v3, %v754_v44  ;;  %v1076_v50 = vsel %vm534_vm1, %v908_v36, 0.0  ;;  %v3746_v59 = vld [vmem:[#allocation5_spill] sm:$0xff]  ;;  %v3748_v3 = vld [vmem:[#allocation4_spill] sm:$0xff]  ;;  %v1079_v41 = vsel %vm534_vm1, %v909_v14, 0.0 }
 0x1bf   :  { %v714_v11 = vpop.xlane.xlu1 %713  ;;  %984 = vadd.xlane.f32.xlu1 %v983_v51  ;;  %1077 = vadd.xlane.f32.xlu0 %v1076_v50  ;;  %v711_v8 = vpop.xlane.xlu0 %710 }
 0x1c0   :  { %3743 = vst [vmem:[#allocation3_spill] sm:$0xff] %v3118_v0  ;;  %3745 = vst [vmem:[#allocation2_spill] sm:$0xff] %v3121_v55  ;;  %v787_v9 = vmul.f32 0.0625, %v714_v11  ;;  %v786_v24 = vmul.f32 0.0625, %v711_v8  ;;  %v882_v43 = vmul.f32 %v3121_v55, %v3121_v55  ;;  %v883_v27 = vmul.f32 %v3118_v0, %v3118_v0 }
 0x1c2   :  { %v3131_v44 = vsub.f32 %v3746_v59, %v787_v9  ;;  %v3134_v36 = vsub.f32 %v3748_v3, %v786_v24  ;;  %v998_v51 = vsel %vm534_vm1, %v882_v43, 0.0  ;;  %v1001_v0 = vsel %vm534_vm1, %v883_v27, 0.0  ;;  %v3750_v9 = vld [vmem:[#allocation7_spill] sm:$0xff]  ;;  %v3752_v24 = vld [vmem:[#allocation6_spill] sm:$0xff] }
 0x1c3   :  { %v612_v50 = vpop.xlane.xlu1 %611  ;;  %1080 = vadd.xlane.f32.xlu1 %v1079_v41  ;;  %999 = vadd.xlane.f32.xlu0 %v998_v51  ;;  %v609_v11 = vpop.xlane.xlu0 %608 }
 0x1c4   :  { %3747 = vst [vmem:[#allocation5_spill] sm:$0xff] %v3131_v44  ;;  %3749 = vst [vmem:[#allocation4_spill] sm:$0xff] %v3134_v36  ;;  %v753_v8 = vmul.f32 0.0625, %v612_v50  ;;  %v752_v47 = vmul.f32 0.0625, %v609_v11  ;;  %v914_v55 = vmul.f32 %v3134_v36, %v3134_v36  ;;  %v915_v41 = vmul.f32 %v3131_v44, %v3131_v44 }
 0x1c6   :  { %v3142_v59 = vsub.f32 %v3750_v9, %v753_v8  ;;  %v3145_v3 = vsub.f32 %v3752_v24, %v752_v47  ;;  %v1094_v14 = vsel %vm534_vm1, %v914_v55, 0.0  ;;  %v3755_v9 = vld [vmem:[#allocation8_spill] sm:$0xff]  ;;  %v1097_v24 = vsel %vm534_vm1, %v915_v41, 0.0 }
 0x1c7   :  { %v708_v43 = vpop.xlane.xlu1 %707  ;;  %1002 = vadd.xlane.f32.xlu1 %v1001_v0  ;;  %1095 = vadd.xlane.f32.xlu0 %v1094_v14  ;;  %v705_v51 = vpop.xlane.xlu0 %704 }
 0x1c8   :  { %3751 = vst [vmem:[#allocation7_spill] sm:$0xff] %v3142_v59  ;;  %3753 = vst [vmem:[#allocation6_spill] sm:$0xff] %v3145_v3  ;;  %v785_v50 = vmul.f32 0.0625, %v708_v43  ;;  %v784_v11 = vmul.f32 0.0625, %v705_v51  ;;  %v880_v27 = vmul.f32 %v3145_v3, %v3145_v3  ;;  %v881_v8 = vmul.f32 %v3142_v59, %v3142_v59 }
 0x1ca   :  { %v3155_v47 = vsub.f32 %v2783_v56, %v785_v50  ;;  %v3158_v55 = vsub.f32 %v3755_v9, %v784_v11  ;;  %v992_v0 = vsel %vm534_vm1, %v880_v27, 0.0  ;;  %v995_v59 = vsel %vm534_vm1, %v881_v8, 0.0  ;;  %v3758_v50 = vld [vmem:[#allocation9_spill] sm:$0xff] }
 0x1cb   :  { %v630_v14 = vpop.xlane.xlu1 %629  ;;  %1098 = vadd.xlane.f32.xlu1 %v1097_v24  ;;  %993 = vadd.xlane.f32.xlu0 %v992_v0  ;;  %v627_v43 = vpop.xlane.xlu0 %626 }
 0x1cc   :  { %3754 = vst [vmem:[#allocation20_spill] sm:$0xff] %v3155_v47  ;;  %3756 = vst [vmem:[#allocation8_spill] sm:$0xff] %v3158_v55  ;;  %v759_v51 = vmul.f32 0.0625, %v630_v14  ;;  %v758_v44 = vmul.f32 0.0625, %v627_v43  ;;  %v912_v3 = vmul.f32 %v3158_v55, %v3158_v55  ;;  %v913_v27 = vmul.f32 %v3155_v47, %v3155_v47  ;;  %v3761_v55 = vld [vmem:[#allocation12_spill] sm:$0xff] }
 0x1ce   :  { %v3166_v56 = vsub.f32 %v2793_v31, %v759_v51  ;;  %v3169_v11 = vsub.f32 %v3758_v50, %v758_v44  ;;  %v1088_v41 = vsel %vm534_vm1, %v912_v3, 0.0  ;;  %v1091_v8 = vsel %vm534_vm1, %v913_v27, 0.0 }
 0x1cf   :  { %v726_v9 = vpop.xlane.xlu1 %725  ;;  %996 = vadd.xlane.f32.xlu1 %v995_v59  ;;  %1089 = vadd.xlane.f32.xlu0 %v1088_v41  ;;  %v723_v24 = vpop.xlane.xlu0 %722  ;;  %v3760_v41 = vld [vmem:[#allocation13_spill] sm:$0xff] }
 0x1d0   :  { %3757 = vst [vmem:[#allocation21_spill] sm:$0xff] %v3166_v56  ;;  %3759 = vst [vmem:[#allocation9_spill] sm:$0xff] %v3169_v11  ;;  %v886_v0 = vmul.f32 %v3169_v11, %v3169_v11  ;;  %v887_v44 = vmul.f32 %v3166_v56, %v3166_v56  ;;  %v791_v50 = vmul.f32 0.0625, %v726_v9  ;;  %v790_v59 = vmul.f32 0.0625, %v723_v24  ;;  %v3763_v24 = vld [vmem:[#allocation11_spill] sm:$0xff] }
 0x1d2   :  { %v1010_v31 = vsel %vm534_vm1, %v886_v0, 0.0  ;;  %v1013_v27 = vsel %vm534_vm1, %v887_v44, 0.0 }
 0x1d3   :  { %v624_v14 = vpop.xlane.xlu1 %623  ;;  %1092 = vadd.xlane.f32.xlu1 %v1091_v8  ;;  %1011 = vadd.xlane.f32.xlu0 %v1010_v31  ;;  %v621_v3 = vpop.xlane.xlu0 %620  ;;  %v3192_v31 = vsub.f32 %v3763_v24, %v791_v50 }
 0x1d4   :  { %v757_v43 = vmul.f32 0.0625, %v624_v14  ;;  %v756_v51 = vmul.f32 0.0625, %v621_v3  ;;  %v3765_v14 = vld [vmem:[#allocation10_spill] sm:$0xff] }
 0x1d5   :  { %3764 = vst [vmem:[#allocation12_spill] sm:$0xff] %v3192_v31  ;;  %v3195_v3 = vsub.f32 %v3765_v14, %v790_v59 }
 0x1d6   :  { %v3181_v47 = vsub.f32 %v3760_v41, %v757_v43  ;;  %v3184_v11 = vsub.f32 %v3761_v55, %v756_v51  ;;  %v3767_v55 = vld [vmem:[#allocation14_spill] sm:$0xff] }
 0x1d7   :  { %v720_v0 = vpop.xlane.xlu1 %719  ;;  %1014 = vadd.xlane.f32.xlu1 %v1013_v27  ;;  %v717_v36 = vpop.xlane.xlu0 %716  ;;  %3766 = vst [vmem:[#allocation11_spill] sm:$0xff] %v3195_v3 }
 0x1d8   :  { %3762 = vst [vmem:[#allocation13_spill] sm:$0xff] %v3184_v11  ;;  %v789_v56 = vmul.f32 0.0625, %v720_v0  ;;  %v788_v25 = vmul.f32 0.0625, %v717_v36  ;;  %v885_v8 = vmul.f32 %v3181_v47, %v3181_v47  ;;  %v884_v9 = vmul.f32 %v3184_v11, %v3184_v11 }
 0x1da   :  { %v3198_v43 = vsub.f32 %v3767_v55, %v789_v56  ;;  %v3201_v44 = vsub.f32 %v2820_v60, %v788_v25  ;;  %v1007_v36 = vsel %vm534_vm1, %v885_v8, 0.0  ;;  %v1004_v51 = vsel %vm534_vm1, %v884_v9, 0.0 }
 0x1db   :  { %1008 = vadd.xlane.f32.xlu1 %v1007_v36  ;;  %1005 = vadd.xlane.f32.xlu0 %v1004_v51  ;;  %v919_v60 = vmul.f32 %v3192_v31, %v3192_v31  ;;  %v918_v25 = vmul.f32 %v3195_v3, %v3195_v3 }
 0x1dc   :  { %3768 = vst [vmem:[#allocation10_spill] sm:$0xff] %v3198_v43  ;;  %3769 = vst [vmem:[#allocation14_spill] sm:$0xff] %v3201_v44  ;;  %v917_v41 = vmul.f32 %v3198_v43, %v3198_v43  ;;  %v916_v50 = vmul.f32 %v3201_v44, %v3201_v44 }
 0x1dd   :  { %v1109_v27 = vsel %vm534_vm1, %v919_v60, 0.0  ;;  %v1106_v0 = vsel %vm534_vm1, %v918_v25, 0.0 }
 0x1de   :  { %v1103_v59 = vsel %vm534_vm1, %v917_v41, 0.0  ;;  %v1100_v56 = vsel %vm534_vm1, %v916_v50, 0.0 }
 0x1df   :  { %1104 = vadd.xlane.f32.xlu1 %v1103_v59  ;;  %1101 = vadd.xlane.f32.xlu0 %v1100_v56 }
 0x1e3   :  { %1110 = vadd.xlane.f32.xlu1 %v1109_v27  ;;  %1107 = vadd.xlane.f32.xlu0 %v1106_v0 }
 0x1ec   :  { %v928_v8 = vpop.xlane.xlu0 %927 }
 0x1ed   :  { %v1114_v9 = vmul.f32 0.0625, %v928_v8 }
 0x1ef   :  { %v1178_v24 = vadd.f32 1e-06, %v1114_v9 }
 0x1f0   :  { %v931_v14 = vpop.xlane.xlu1 %930  ;;  %v1024_v55 = vpop.xlane.xlu0 %1023 }
 0x1f1   :  { %2115 = vrsqrt.f32 %v1178_v24  ;;  %v1115_v36 = vmul.f32 0.0625, %v931_v14  ;;  %v1146_v51 = vmul.f32 0.0625, %v1024_v55 }
 0x1f3   :  { %v1179_v41 = vadd.f32 1e-06, %v1115_v36  ;;  %v1210_v50 = vadd.f32 1e-06, %v1146_v51 }
 0x1f4   :  { %v1027_v31 = vpop.xlane.xlu1 %1026  ;;  %v922_v3 = vpop.xlane.xlu0 %921 }
 0x1f5   :  { %2117 = vrsqrt.f32 %v1179_v41  ;;  %v1147_v59 = vmul.f32 0.0625, %v1027_v31  ;;  %v1112_v56 = vmul.f32 0.0625, %v922_v3  ;;  %v3220_v31 = vld [vmem:[%s3688_s3] ss:$0 sm:$0xff] }
 0x1f6   :  { %2119 = vrsqrt.f32 %v1210_v50 }
 0x1f7   :  { %v1211_v60 = vadd.f32 1e-06, %v1147_v59  ;;  %v1176_v25 = vadd.f32 1e-06, %v1112_v56  ;;  %v3226_v59 = vld [vmem:[%s3689_s4] ss:$0 sm:$0xff] }
 0x1f8   :  { %v925_v27 = vpop.xlane.xlu1 %924  ;;  %v1018_v0 = vpop.xlane.xlu0 %1017 }
 0x1f9   :  { %2121 = vrsqrt.f32 %v1211_v60  ;;  %v1113_v8 = vmul.f32 0.0625, %v925_v27  ;;  %v1144_v9 = vmul.f32 0.0625, %v1018_v0 }
 0x1fa   :  { %2123 = vrsqrt.f32 %v1176_v25 }
 0x1fb   :  { %v1177_v44 = vadd.f32 1e-06, %v1113_v8  ;;  %v1208_v24 = vadd.f32 1e-06, %v1144_v9 }
 0x1fc   :  { %v1021_v14 = vpop.xlane.xlu1 %1020  ;;  %v940_v55 = vpop.xlane.xlu0 %939 }
 0x1fd   :  { %2125 = vrsqrt.f32 %v1177_v44  ;;  %v1145_v36 = vmul.f32 0.0625, %v1021_v14  ;;  %v1118_v51 = vmul.f32 0.0625, %v940_v55  ;;  %v3770_v14 = vld [vmem:[#allocation15_spill] sm:$0xff] }
 0x1fe   :  { %v2116_v43 = vpop.eup %2115  ;;  %2127 = vrsqrt.f32 %v1208_v24 }
 0x1ff   :  { %v1306_v3 = vmul.f32 %v2116_v43, %v2837_v6  ;;  %v1209_v41 = vadd.f32 1e-06, %v1145_v36  ;;  %v1182_v50 = vadd.f32 1e-06, %v1118_v51 }
 0x200   :  { %v943_v56 = vpop.xlane.xlu1 %942  ;;  %v1036_v44 = vpop.xlane.xlu0 %1035 }
 0x201   :  { %v1377_v60 = vmul.f32 %v3220_v31, %v1306_v3  ;;  %2129 = vrsqrt.f32 %v1209_v41  ;;  %v1119_v25 = vmul.f32 0.0625, %v943_v56  ;;  %v1150_v27 = vmul.f32 0.0625, %v1036_v44 }
 0x202   :  { %v2118_v0 = vpop.eup %2117  ;;  %2131 = vrsqrt.f32 %v1182_v50 }
 0x203   :  { %v2120_v8 = vpop.eup %2119  ;;  %v1448_v9 = vadd.f32 %v3226_v59, %v1377_v60  ;;  %v1307_v6 = vmul.f32 %v2118_v0, %v2844_v30  ;;  %v1183_v43 = vadd.f32 1e-06, %v1119_v25  ;;  %v1214_v24 = vadd.f32 1e-06, %v1150_v27 }
 0x204   :  { %v1338_v55 = vmul.f32 %v2120_v8, %v3770_v14  ;;  %v1039_v36 = vpop.xlane.xlu1 %1038  ;;  %v934_v51 = vpop.xlane.xlu0 %933 }
 0x205   :  { %v1939_v11 = vpack.c.bf16 %v1448_v9, %v1448_v9  ;;  %v1378_v3 = vmul.f32 %v3220_v31, %v1307_v6  ;;  %2133 = vrsqrt.f32 %v1183_v43  ;;  %v1151_v41 = vmul.f32 0.0625, %v1039_v36 }
 0x206   :  { %v2122_v56 = vpop.eup %2121  ;;  %v1409_v50 = vmul.f32 %v3220_v31, %v1338_v55  ;;  %2135 = vrsqrt.f32 %v1214_v24  ;;  %v1116_v44 = vmul.f32 0.0625, %v934_v51 }
 0x207   :  { %v2124_v60 = vpop.eup %2123  ;;  %1769 = vst.msk [vmem:[%s3690_s5 + $0x8] sm:$0xf] %vm1766_vm2, %v1939_v11  ;;  %v1449_v30 = vadd.f32 %v3226_v59, %v1378_v3  ;;  %v1339_v25 = vmul.f32 %v2122_v56, %v2854_v53  ;;  %v1215_v27 = vadd.f32 1e-06, %v1151_v41 }
 0x208   :  { %v1480_v0 = vadd.f32 %v3226_v59, %v1409_v50  ;;  %v1304_v8 = vmul.f32 %v2124_v60, %v2847_v52  ;;  %v1180_v9 = vadd.f32 1e-06, %v1116_v44  ;;  %v937_v6 = vpop.xlane.xlu1 %936  ;;  %v1030_v43 = vpop.xlane.xlu0 %1029  ;;  %v3771_v44 = vld [vmem:[#allocation16_spill] sm:$0xff] }
 0x209   :  { %v1940_v24 = vpack.c.bf16 %v1449_v30, %v1449_v30  ;;  %v1410_v14 = vmul.f32 %v3220_v31, %v1339_v25  ;;  %2137 = vrsqrt.f32 %v1215_v27  ;;  %v1117_v55 = vmul.f32 0.0625, %v937_v6 }
 0x20a   :  { %v2126_v36 = vpop.eup %2125  ;;  %v1971_v51 = vpack.c.bf16 %v1480_v0, %v1480_v0  ;;  %v1375_v11 = vmul.f32 %v3220_v31, %v1304_v8  ;;  %2139 = vrsqrt.f32 %v1180_v9  ;;  %v1148_v3 = vmul.f32 0.0625, %v1030_v43 }
 0x20b   :  { %v2128_v53 = vpop.eup %2127  ;;  %1770 = vst.msk [vmem:[%s3690_s5 + $0xc] sm:$0xf] %vm1766_vm2, %v1940_v24  ;;  %v1481_v52 = vadd.f32 %v3226_v59, %v1410_v14  ;;  %v1305_v41 = vmul.f32 %v2126_v36, %v2870_v12  ;;  %v1181_v56 = vadd.f32 1e-06, %v1117_v55 }
 0x20c   :  { %1801 = vst.msk [vmem:[%s3690_s5 + $0x88] sm:$0xf] %vm1766_vm2, %v1971_v51  ;;  %v1446_v50 = vadd.f32 %v3226_v59, %v1375_v11  ;;  %v1336_v60 = vmul.f32 %v2128_v53, %v3771_v44  ;;  %v1212_v30 = vadd.f32 1e-06, %v1148_v3  ;;  %v1033_v25 = vpop.xlane.xlu1 %1032  ;;  %v952_v27 = vpop.xlane.xlu0 %951 }
 0x20d   :  { %v1972_v0 = vpack.c.bf16 %v1481_v52, %v1481_v52  ;;  %v1376_v8 = vmul.f32 %v3220_v31, %v1305_v41  ;;  %2141 = vrsqrt.f32 %v1181_v56  ;;  %v1149_v9 = vmul.f32 0.0625, %v1033_v25 }
 0x20e   :  { %v2130_v6 = vpop.eup %2129  ;;  %v1937_v12 = vpack.c.bf16 %v1446_v50, %v1446_v50  ;;  %v1407_v43 = vmul.f32 %v3220_v31, %v1336_v60  ;;  %2143 = vrsqrt.f32 %v1212_v30  ;;  %v1122_v24 = vmul.f32 0.0625, %v952_v27 }
 0x20f   :  { %v2132_v14 = vpop.eup %2131  ;;  %1802 = vst.msk [vmem:[%s3690_s5 + $0x8c] sm:$0xf] %vm1766_vm2, %v1972_v0  ;;  %v1447_v55 = vadd.f32 %v3226_v59, %v1376_v8  ;;  %v1337_v36 = vmul.f32 %v2130_v6, %v2867_v49  ;;  %v1213_v51 = vadd.f32 1e-06, %v1149_v9 }
 0x210   :  { %1767 = vst.msk [vmem:[%s3690_s5] sm:$0xf] %vm1766_vm2, %v1937_v12  ;;  %v1478_v11 = vadd.f32 %v3226_v59, %v1407_v43  ;;  %v1310_v3 = vmul.f32 %v2132_v14, %v2881_v57  ;;  %v1186_v53 = vadd.f32 1e-06, %v1122_v24  ;;  %v955_v52 = vpop.xlane.xlu1 %954  ;;  %v1048_v41 = vpop.xlane.xlu0 %1047 }
 0x211   :  { %v1938_v56 = vpack.c.bf16 %v1447_v55, %v1447_v55  ;;  %v1408_v50 = vmul.f32 %v3220_v31, %v1337_v36  ;;  %2145 = vrsqrt.f32 %v1213_v51  ;;  %v1123_v44 = vmul.f32 0.0625, %v955_v52 }
 0x212   :  { %v2134_v60 = vpop.eup %2133  ;;  %v1969_v49 = vpack.c.bf16 %v1478_v11, %v1478_v11  ;;  %v1381_v30 = vmul.f32 %v3220_v31, %v1310_v3  ;;  %2147 = vrsqrt.f32 %v1186_v53  ;;  %v1154_v25 = vmul.f32 0.0625, %v1048_v41 }
 0x213   :  { %v2136_v27 = vpop.eup %2135  ;;  %1768 = vst.msk [vmem:[%s3690_s5 + $0x4] sm:$0xf] %vm1766_vm2, %v1938_v56  ;;  %v1479_v57 = vadd.f32 %v3226_v59, %v1408_v50  ;;  %v1311_v0 = vmul.f32 %v2134_v60, %v2878_v58  ;;  %v1187_v8 = vadd.f32 1e-06, %v1123_v44 }
 0x214   :  { %1799 = vst.msk [vmem:[%s3690_s5 + $0x80] sm:$0xf] %vm1766_vm2, %v1969_v49  ;;  %v1452_v9 = vadd.f32 %v3226_v59, %v1381_v30  ;;  %v1342_v6 = vmul.f32 %v2136_v27, %v2894_v21  ;;  %v1218_v12 = vadd.f32 1e-06, %v1154_v25  ;;  %v1051_v43 = vpop.xlane.xlu1 %1050  ;;  %v946_v24 = vpop.xlane.xlu0 %945 }
 0x215   :  { %v1970_v14 = vpack.c.bf16 %v1479_v57, %v1479_v57  ;;  %v1382_v55 = vmul.f32 %v3220_v31, %v1311_v0  ;;  %2149 = vrsqrt.f32 %v1187_v8  ;;  %v1155_v36 = vmul.f32 0.0625, %v1051_v43 }
 0x216   :  { %v2138_v51 = vpop.eup %2137  ;;  %v1943_v58 = vpack.c.bf16 %v1452_v9, %v1452_v9  ;;  %v1413_v11 = vmul.f32 %v3220_v31, %v1342_v6  ;;  %2151 = vrsqrt.f32 %v1218_v12  ;;  %v1120_v3 = vmul.f32 0.0625, %v946_v24 }
 0x217   :  { %v2140_v53 = vpop.eup %2139  ;;  %1800 = vst.msk [vmem:[%s3690_s5 + $0x84] sm:$0xf] %vm1766_vm2, %v1970_v14  ;;  %v1453_v21 = vadd.f32 %v3226_v59, %v1382_v55  ;;  %v1343_v52 = vmul.f32 %v2138_v51, %v2891_v63  ;;  %v1219_v41 = vadd.f32 1e-06, %v1155_v36 }
 0x218   :  { %1773 = vst.msk [vmem:[%s3690_s5 + $0x18] sm:$0xf] %vm1766_vm2, %v1943_v58  ;;  %v1484_v56 = vadd.f32 %v3226_v59, %v1413_v11  ;;  %v1308_v50 = vmul.f32 %v2140_v53, %v2905_v4  ;;  %v1184_v44 = vadd.f32 1e-06, %v1120_v3  ;;  %v949_v60 = vpop.xlane.xlu1 %948  ;;  %v1042_v49 = vpop.xlane.xlu0 %1041 }
 0x219   :  { %v1944_v30 = vpack.c.bf16 %v1453_v21, %v1453_v21  ;;  %v1414_v25 = vmul.f32 %v3220_v31, %v1343_v52  ;;  %2153 = vrsqrt.f32 %v1219_v41  ;;  %v1121_v27 = vmul.f32 0.0625, %v949_v60 }
 0x21a   :  { %v2142_v57 = vpop.eup %2141  ;;  %v1975_v63 = vpack.c.bf16 %v1484_v56, %v1484_v56  ;;  %v1379_v0 = vmul.f32 %v3220_v31, %v1308_v50  ;;  %2155 = vrsqrt.f32 %v1184_v44  ;;  %v1152_v8 = vmul.f32 0.0625, %v1042_v49 }
 0x21b   :  { %v2144_v9 = vpop.eup %2143  ;;  %1774 = vst.msk [vmem:[%s3690_s5 + $0x1c] sm:$0xf] %vm1766_vm2, %v1944_v30  ;;  %v1485_v4 = vadd.f32 %v3226_v59, %v1414_v25  ;;  %v1309_v6 = vmul.f32 %v2142_v57, %v2902_v5  ;;  %v1185_v12 = vadd.f32 1e-06, %v1121_v27 }
 0x21c   :  { %1805 = vst.msk [vmem:[%s3690_s5 + $0x98] sm:$0xf] %vm1766_vm2, %v1975_v63  ;;  %v1450_v43 = vadd.f32 %v3226_v59, %v1379_v0  ;;  %v1340_v24 = vmul.f32 %v2144_v9, %v2918_v42  ;;  %v1216_v14 = vadd.f32 1e-06, %v1152_v8  ;;  %v1045_v55 = vpop.xlane.xlu1 %1044  ;;  %v964_v36 = vpop.xlane.xlu0 %963 }
 0x21d   :  { %v1976_v51 = vpack.c.bf16 %v1485_v4, %v1485_v4  ;;  %v1380_v58 = vmul.f32 %v3220_v31, %v1309_v6  ;;  %2157 = vrsqrt.f32 %v1185_v12  ;;  %v1153_v11 = vmul.f32 0.0625, %v1045_v55 }
 0x21e   :  { %v2146_v3 = vpop.eup %2145  ;;  %v1941_v5 = vpack.c.bf16 %v1450_v43, %v1450_v43  ;;  %v1411_v53 = vmul.f32 %v3220_v31, %v1340_v24  ;;  %2159 = vrsqrt.f32 %v1216_v14  ;;  %v1126_v21 = vmul.f32 0.0625, %v964_v36 }
 0x21f   :  { %v2148_v52 = vpop.eup %2147  ;;  %1806 = vst.msk [vmem:[%s3690_s5 + $0x9c] sm:$0xf] %vm1766_vm2, %v1976_v51  ;;  %v1451_v42 = vadd.f32 %v3226_v59, %v1380_v58  ;;  %v1341_v41 = vmul.f32 %v2146_v3, %v2915_v10  ;;  %v1217_v56 = vadd.f32 1e-06, %v1153_v11 }
 0x220   :  { %1771 = vst.msk [vmem:[%s3690_s5 + $0x10] sm:$0xf] %vm1766_vm2, %v1941_v5  ;;  %v1482_v50 = vadd.f32 %v3226_v59, %v1411_v53  ;;  %v1314_v44 = vmul.f32 %v2148_v52, %v2929_v17  ;;  %v1190_v60 = vadd.f32 1e-06, %v1126_v21  ;;  %v967_v49 = vpop.xlane.xlu1 %966  ;;  %v1060_v30 = vpop.xlane.xlu0 %1059 }
 0x221   :  { %v1942_v25 = vpack.c.bf16 %v1451_v42, %v1451_v42  ;;  %v1412_v27 = vmul.f32 %v3220_v31, %v1341_v41  ;;  %2161 = vrsqrt.f32 %v1217_v56  ;;  %v1127_v57 = vmul.f32 0.0625, %v967_v49 }
 0x222   :  { %v2150_v63 = vpop.eup %2149  ;;  %v1973_v10 = vpack.c.bf16 %v1482_v50, %v1482_v50  ;;  %v1385_v0 = vmul.f32 %v3220_v31, %v1314_v44  ;;  %2163 = vrsqrt.f32 %v1190_v60  ;;  %v1158_v8 = vmul.f32 0.0625, %v1060_v30 }
 0x223   :  { %v2152_v9 = vpop.eup %2151  ;;  %1772 = vst.msk [vmem:[%s3690_s5 + $0x14] sm:$0xf] %vm1766_vm2, %v1942_v25  ;;  %v1483_v17 = vadd.f32 %v3226_v59, %v1412_v27  ;;  %v1315_v4 = vmul.f32 %v2150_v63, %v2926_v18  ;;  %v1191_v6 = vadd.f32 1e-06, %v1127_v57 }
 0x224   :  { %1803 = vst.msk [vmem:[%s3690_s5 + $0x90] sm:$0xf] %vm1766_vm2, %v1973_v10  ;;  %v1456_v12 = vadd.f32 %v3226_v59, %v1385_v0  ;;  %v1346_v43 = vmul.f32 %v2152_v9, %v2942_v39  ;;  %v1222_v24 = vadd.f32 1e-06, %v1158_v8  ;;  %v1063_v14 = vpop.xlane.xlu1 %1062  ;;  %v958_v55 = vpop.xlane.xlu0 %957 }
 0x225   :  { %v1974_v36 = vpack.c.bf16 %v1483_v17, %v1483_v17  ;;  %v1386_v51 = vmul.f32 %v3220_v31, %v1315_v4  ;;  %2165 = vrsqrt.f32 %v1191_v6  ;;  %v1159_v58 = vmul.f32 0.0625, %v1063_v14 }
 0x226   :  { %v2154_v11 = vpop.eup %2153  ;;  %v1947_v18 = vpack.c.bf16 %v1456_v12, %v1456_v12  ;;  %v1417_v3 = vmul.f32 %v3220_v31, %v1346_v43  ;;  %2167 = vrsqrt.f32 %v1222_v24  ;;  %v1124_v5 = vmul.f32 0.0625, %v958_v55 }
 0x227   :  { %v2156_v53 = vpop.eup %2155  ;;  %1804 = vst.msk [vmem:[%s3690_s5 + $0x94] sm:$0xf] %vm1766_vm2, %v1974_v36  ;;  %v1457_v39 = vadd.f32 %v3226_v59, %v1386_v51  ;;  %v1347_v21 = vmul.f32 %v2154_v11, %v2939_v23  ;;  %v1223_v52 = vadd.f32 1e-06, %v1159_v58 }
 0x228   :  { %1777 = vst.msk [vmem:[%s3690_s5 + $0x28] sm:$0xf] %vm1766_vm2, %v1947_v18  ;;  %v1488_v42 = vadd.f32 %v3226_v59, %v1417_v3  ;;  %v1312_v41 = vmul.f32 %v2156_v53, %v2953_v28  ;;  %v1188_v56 = vadd.f32 1e-06, %v1124_v5  ;;  %v961_v50 = vpop.xlane.xlu1 %960  ;;  %v1054_v44 = vpop.xlane.xlu0 %1053 }
 0x229   :  { %v1948_v60 = vpack.c.bf16 %v1457_v39, %v1457_v39  ;;  %v1418_v49 = vmul.f32 %v3220_v31, %v1347_v21  ;;  %2169 = vrsqrt.f32 %v1223_v52  ;;  %v1125_v30 = vmul.f32 0.0625, %v961_v50 }
 0x22a   :  { %v2158_v25 = vpop.eup %2157  ;;  %v1979_v23 = vpack.c.bf16 %v1488_v42, %v1488_v42  ;;  %v1383_v27 = vmul.f32 %v3220_v31, %v1312_v41  ;;  %2171 = vrsqrt.f32 %v1188_v56  ;;  %v1156_v57 = vmul.f32 0.0625, %v1054_v44 }
 0x22b   :  { %v2160_v63 = vpop.eup %2159  ;;  %1778 = vst.msk [vmem:[%s3690_s5 + $0x2c] sm:$0xf] %vm1766_vm2, %v1948_v60  ;;  %v1489_v28 = vadd.f32 %v3226_v59, %v1418_v49  ;;  %v1313_v10 = vmul.f32 %v2158_v25, %v2950_v29  ;;  %v1189_v0 = vadd.f32 1e-06, %v1125_v30 }
 0x22c   :  { %1809 = vst.msk [vmem:[%s3690_s5 + $0xa8] sm:$0xf] %vm1766_vm2, %v1979_v23  ;;  %v1454_v8 = vadd.f32 %v3226_v59, %v1383_v27  ;;  %v1344_v9 = vmul.f32 %v2160_v63, %v2966_v40  ;;  %v1220_v17 = vadd.f32 1e-06, %v1156_v57  ;;  %v1057_v4 = vpop.xlane.xlu1 %1056  ;;  %v976_v6 = vpop.xlane.xlu0 %975 }
 0x22d   :  { %v1980_v12 = vpack.c.bf16 %v1489_v28, %v1489_v28  ;;  %v1384_v43 = vmul.f32 %v3220_v31, %v1313_v10  ;;  %2173 = vrsqrt.f32 %v1189_v0  ;;  %v1157_v24 = vmul.f32 0.0625, %v1057_v4 }
 0x22e   :  { %v2162_v14 = vpop.eup %2161  ;;  %v1945_v29 = vpack.c.bf16 %v1454_v8, %v1454_v8  ;;  %v1415_v55 = vmul.f32 %v3220_v31, %v1344_v9  ;;  %2175 = vrsqrt.f32 %v1220_v17  ;;  %v1130_v36 = vmul.f32 0.0625, %v976_v6 }
 0x22f   :  { %v2164_v51 = vpop.eup %2163  ;;  %1810 = vst.msk [vmem:[%s3690_s5 + $0xac] sm:$0xf] %vm1766_vm2, %v1980_v12  ;;  %v1455_v40 = vadd.f32 %v3226_v59, %v1384_v43  ;;  %v1345_v58 = vmul.f32 %v2162_v14, %v2963_v34  ;;  %v1221_v11 = vadd.f32 1e-06, %v1157_v24 }
 0x230   :  { %1775 = vst.msk [vmem:[%s3690_s5 + $0x20] sm:$0xf] %vm1766_vm2, %v1945_v29  ;;  %v1486_v18 = vadd.f32 %v3226_v59, %v1415_v55  ;;  %v1318_v3 = vmul.f32 %v2164_v51, %v2977_v45  ;;  %v1194_v5 = vadd.f32 1e-06, %v1130_v36  ;;  %v979_v53 = vpop.xlane.xlu1 %978  ;;  %v1072_v39 = vpop.xlane.xlu0 %1071 }
 0x231   :  { %v1946_v21 = vpack.c.bf16 %v1455_v40, %v1455_v40  ;;  %v1416_v52 = vmul.f32 %v3220_v31, %v1345_v58  ;;  %2177 = vrsqrt.f32 %v1221_v11  ;;  %v1131_v42 = vmul.f32 0.0625, %v979_v53 }
 0x232   :  { %v2166_v41 = vpop.eup %2165  ;;  %v1977_v34 = vpack.c.bf16 %v1486_v18, %v1486_v18  ;;  %v1389_v56 = vmul.f32 %v3220_v31, %v1318_v3  ;;  %2179 = vrsqrt.f32 %v1194_v5  ;;  %v1162_v50 = vmul.f32 0.0625, %v1072_v39 }
 0x233   :  { %v2168_v44 = vpop.eup %2167  ;;  %1776 = vst.msk [vmem:[%s3690_s5 + $0x24] sm:$0xf] %vm1766_vm2, %v1946_v21  ;;  %v1487_v45 = vadd.f32 %v3226_v59, %v1416_v52  ;;  %v1319_v60 = vmul.f32 %v2166_v41, %v2974_v46  ;;  %v1195_v49 = vadd.f32 1e-06, %v1131_v42 }
 0x234   :  { %1807 = vst.msk [vmem:[%s3690_s5 + $0xa0] sm:$0xf] %vm1766_vm2, %v1977_v34  ;;  %v1460_v30 = vadd.f32 %v3226_v59, %v1389_v56  ;;  %v1350_v25 = vmul.f32 %v2168_v44, %v2990_v35  ;;  %v1226_v23 = vadd.f32 1e-06, %v1162_v50  ;;  %v1075_v27 = vpop.xlane.xlu1 %1074  ;;  %v970_v57 = vpop.xlane.xlu0 %969 }
 0x235   :  { %v1978_v63 = vpack.c.bf16 %v1487_v45, %v1487_v45  ;;  %v1390_v28 = vmul.f32 %v3220_v31, %v1319_v60  ;;  %2181 = vrsqrt.f32 %v1195_v49  ;;  %v1163_v10 = vmul.f32 0.0625, %v1075_v27 }
 0x236   :  { %v2170_v0 = vpop.eup %2169  ;;  %v1951_v46 = vpack.c.bf16 %v1460_v30, %v1460_v30  ;;  %v1421_v8 = vmul.f32 %v3220_v31, %v1350_v25  ;;  %2183 = vrsqrt.f32 %v1226_v23  ;;  %v1128_v9 = vmul.f32 0.0625, %v970_v57 }
 0x237   :  { %v2172_v17 = vpop.eup %2171  ;;  %1808 = vst.msk [vmem:[%s3690_s5 + $0xa4] sm:$0xf] %vm1766_vm2, %v1978_v63  ;;  %v1461_v35 = vadd.f32 %v3226_v59, %v1390_v28  ;;  %v1351_v4 = vmul.f32 %v2170_v0, %v2987_v54  ;;  %v1227_v6 = vadd.f32 1e-06, %v1163_v10 }
 0x238   :  { %1781 = vst.msk [vmem:[%s3690_s5 + $0x38] sm:$0xf] %vm1766_vm2, %v1951_v46  ;;  %v1492_v12 = vadd.f32 %v3226_v59, %v1421_v8  ;;  %v1316_v43 = vmul.f32 %v2172_v17, %v3001_v61  ;;  %v1192_v24 = vadd.f32 1e-06, %v1128_v9  ;;  %v973_v14 = vpop.xlane.xlu1 %972  ;;  %v1066_v29 = vpop.xlane.xlu0 %1065 }
 0x239   :  { %v1952_v55 = vpack.c.bf16 %v1461_v35, %v1461_v35  ;;  %v1422_v36 = vmul.f32 %v3220_v31, %v1351_v4  ;;  %2185 = vrsqrt.f32 %v1227_v6  ;;  %v1129_v51 = vmul.f32 0.0625, %v973_v14 }
 0x23a   :  { %v2174_v40 = vpop.eup %2173  ;;  %v1983_v54 = vpack.c.bf16 %v1492_v12, %v1492_v12  ;;  %v1387_v58 = vmul.f32 %v3220_v31, %v1316_v43  ;;  %2187 = vrsqrt.f32 %v1192_v24  ;;  %v1160_v11 = vmul.f32 0.0625, %v1066_v29 }
 0x23b   :  { %v2176_v18 = vpop.eup %2175  ;;  %1782 = vst.msk [vmem:[%s3690_s5 + $0x3c] sm:$0xf] %vm1766_vm2, %v1952_v55  ;;  %v1493_v61 = vadd.f32 %v3226_v59, %v1422_v36  ;;  %v1317_v3 = vmul.f32 %v2174_v40, %v2998_v62  ;;  %v1193_v5 = vadd.f32 1e-06, %v1129_v51 }
 0x23c   :  { %1813 = vst.msk [vmem:[%s3690_s5 + $0xb8] sm:$0xf] %vm1766_vm2, %v1983_v54  ;;  %v1458_v53 = vadd.f32 %v3226_v59, %v1387_v58  ;;  %v1348_v39 = vmul.f32 %v2176_v18, %v3014_v15  ;;  %v1224_v21 = vadd.f32 1e-06, %v1160_v11  ;;  %v1069_v52 = vpop.xlane.xlu1 %1068  ;;  %v988_v42 = vpop.xlane.xlu0 %987 }
 0x23d   :  { %v1984_v41 = vpack.c.bf16 %v1493_v61, %v1493_v61  ;;  %v1388_v34 = vmul.f32 %v3220_v31, %v1317_v3  ;;  %2189 = vrsqrt.f32 %v1193_v5  ;;  %v1161_v56 = vmul.f32 0.0625, %v1069_v52 }
 0x23e   :  { %v2178_v50 = vpop.eup %2177  ;;  %v1949_v62 = vpack.c.bf16 %v1458_v53, %v1458_v53  ;;  %v1419_v44 = vmul.f32 %v3220_v31, %v1348_v39  ;;  %2191 = vrsqrt.f32 %v1224_v21  ;;  %v1134_v45 = vmul.f32 0.0625, %v988_v42 }
 0x23f   :  { %v2180_v60 = vpop.eup %2179  ;;  %1814 = vst.msk [vmem:[%s3690_s5 + $0xbc] sm:$0xf] %vm1766_vm2, %v1984_v41  ;;  %v1459_v15 = vadd.f32 %v3226_v59, %v1388_v34  ;;  %v1349_v49 = vmul.f32 %v2178_v50, %v3011_v7  ;;  %v1225_v30 = vadd.f32 1e-06, %v1161_v56 }
 0x240   :  { %1779 = vst.msk [vmem:[%s3690_s5 + $0x30] sm:$0xf] %vm1766_vm2, %v1949_v62  ;;  %v1490_v25 = vadd.f32 %v3226_v59, %v1419_v44  ;;  %v1322_v23 = vmul.f32 %v2180_v60, %v3025_v16  ;;  %v1198_v27 = vadd.f32 1e-06, %v1134_v45  ;;  %v991_v57 = vpop.xlane.xlu1 %990  ;;  %v1084_v63 = vpop.xlane.xlu0 %1083 }
 0x241   :  { %v1950_v28 = vpack.c.bf16 %v1459_v15, %v1459_v15  ;;  %v1420_v10 = vmul.f32 %v3220_v31, %v1349_v49  ;;  %2193 = vrsqrt.f32 %v1225_v30  ;;  %v1135_v0 = vmul.f32 0.0625, %v991_v57 }
 0x242   :  { %v2182_v46 = vpop.eup %2181  ;;  %v1981_v7 = vpack.c.bf16 %v1490_v25, %v1490_v25  ;;  %v1393_v8 = vmul.f32 %v3220_v31, %v1322_v23  ;;  %2195 = vrsqrt.f32 %v1198_v27  ;;  %v1166_v9 = vmul.f32 0.0625, %v1084_v63 }
 0x243   :  { %v2184_v17 = vpop.eup %2183  ;;  %1780 = vst.msk [vmem:[%s3690_s5 + $0x34] sm:$0xf] %vm1766_vm2, %v1950_v28  ;;  %v1491_v16 = vadd.f32 %v3226_v59, %v1420_v10  ;;  %v1323_v35 = vmul.f32 %v2182_v46, %v3022_v19  ;;  %v1199_v4 = vadd.f32 1e-06, %v1135_v0 }
 0x244   :  { %1811 = vst.msk [vmem:[%s3690_s5 + $0xb0] sm:$0xf] %vm1766_vm2, %v1981_v7  ;;  %v1464_v6 = vadd.f32 %v3226_v59, %v1393_v8  ;;  %v1354_v12 = vmul.f32 %v2184_v17, %v3038_v20  ;;  %v1230_v43 = vadd.f32 1e-06, %v1166_v9  ;;  %v1087_v24 = vpop.xlane.xlu1 %1086  ;;  %v982_v14 = vpop.xlane.xlu0 %981 }
 0x245   :  { %v1982_v29 = vpack.c.bf16 %v1491_v16, %v1491_v16  ;;  %v1394_v55 = vmul.f32 %v3220_v31, %v1323_v35  ;;  %2197 = vrsqrt.f32 %v1199_v4  ;;  %v1167_v36 = vmul.f32 0.0625, %v1087_v24 }
 0x246   :  { %v2186_v51 = vpop.eup %2185  ;;  %v1955_v19 = vpack.c.bf16 %v1464_v6, %v1464_v6  ;;  %v1425_v40 = vmul.f32 %v3220_v31, %v1354_v12  ;;  %2199 = vrsqrt.f32 %v1230_v43  ;;  %v1132_v54 = vmul.f32 0.0625, %v982_v14 }
 0x247   :  { %v2188_v58 = vpop.eup %2187  ;;  %1812 = vst.msk [vmem:[%s3690_s5 + $0xb4] sm:$0xf] %vm1766_vm2, %v1982_v29  ;;  %v1465_v20 = vadd.f32 %v3226_v59, %v1394_v55  ;;  %v1355_v11 = vmul.f32 %v2186_v51, %v3035_v26  ;;  %v1231_v18 = vadd.f32 1e-06, %v1167_v36 }
 0x248   :  { %1785 = vst.msk [vmem:[%s3690_s5 + $0x48] sm:$0xf] %vm1766_vm2, %v1955_v19  ;;  %v1496_v61 = vadd.f32 %v3226_v59, %v1425_v40  ;;  %v1320_v3 = vmul.f32 %v2188_v58, %v3049_v33  ;;  %v1196_v5 = vadd.f32 1e-06, %v1132_v54  ;;  %v985_v53 = vpop.xlane.xlu1 %984  ;;  %v1078_v39 = vpop.xlane.xlu0 %1077 }
 0x249   :  { %v1956_v21 = vpack.c.bf16 %v1465_v20, %v1465_v20  ;;  %v1426_v52 = vmul.f32 %v3220_v31, %v1355_v11  ;;  %2201 = vrsqrt.f32 %v1231_v18  ;;  %v1133_v42 = vmul.f32 0.0625, %v985_v53 }
 0x24a   :  { %v2190_v41 = vpop.eup %2189  ;;  %v1987_v26 = vpack.c.bf16 %v1496_v61, %v1496_v61  ;;  %v1391_v34 = vmul.f32 %v3220_v31, %v1320_v3  ;;  %2203 = vrsqrt.f32 %v1196_v5  ;;  %v1164_v56 = vmul.f32 0.0625, %v1078_v39 }
 0x24b   :  { %v2192_v50 = vpop.eup %2191  ;;  %1786 = vst.msk [vmem:[%s3690_s5 + $0x4c] sm:$0xf] %vm1766_vm2, %v1956_v21  ;;  %v1497_v33 = vadd.f32 %v3226_v59, %v1426_v52  ;;  %v1321_v62 = vmul.f32 %v2190_v41, %v3046_v37  ;;  %v1197_v44 = vadd.f32 1e-06, %v1133_v42 }
 0x24c   :  { %1817 = vst.msk [vmem:[%s3690_s5 + $0xc8] sm:$0xf] %vm1766_vm2, %v1987_v26  ;;  %v1462_v45 = vadd.f32 %v3226_v59, %v1391_v34  ;;  %v1352_v60 = vmul.f32 %v2192_v50, %v3062_v38  ;;  %v1228_v15 = vadd.f32 1e-06, %v1164_v56  ;;  %v1081_v49 = vpop.xlane.xlu1 %1080  ;;  %v1000_v30 = vpop.xlane.xlu0 %999 }
 0x24d   :  { %v1988_v25 = vpack.c.bf16 %v1497_v33, %v1497_v33  ;;  %v1392_v23 = vmul.f32 %v3220_v31, %v1321_v62  ;;  %2205 = vrsqrt.f32 %v1197_v44  ;;  %v1165_v27 = vmul.f32 0.0625, %v1081_v49 }
 0x24e   :  { %v2194_v57 = vpop.eup %2193  ;;  %v1953_v37 = vpack.c.bf16 %v1462_v45, %v1462_v45  ;;  %v1423_v63 = vmul.f32 %v3220_v31, %v1352_v60  ;;  %2207 = vrsqrt.f32 %v1228_v15  ;;  %v1138_v28 = vmul.f32 0.0625, %v1000_v30  ;;  %v3772_v60 = vld [vmem:[#allocation17_spill] sm:$0xff] }
 0x24f   :  { %v2196_v10 = vpop.eup %2195  ;;  %1818 = vst.msk [vmem:[%s3690_s5 + $0xcc] sm:$0xf] %vm1766_vm2, %v1988_v25  ;;  %v1463_v38 = vadd.f32 %v3226_v59, %v1392_v23  ;;  %v1353_v0 = vmul.f32 %v2194_v57, %v3059_v48  ;;  %v1229_v46 = vadd.f32 1e-06, %v1165_v27  ;;  %v3773_v25 = vld [vmem:[#allocation19_spill] sm:$0xff] }
 0x250   :  { %1783 = vst.msk [vmem:[%s3690_s5 + $0x40] sm:$0xf] %vm1766_vm2, %v1953_v37  ;;  %v1494_v7 = vadd.f32 %v3226_v59, %v1423_v63  ;;  %v1326_v8 = vmul.f32 %v2196_v10, %v3073_v1  ;;  %v1202_v9 = vadd.f32 1e-06, %v1138_v28  ;;  %v1003_v17 = vpop.xlane.xlu1 %1002  ;;  %v1096_v16 = vpop.xlane.xlu0 %1095 }
 0x251   :  { %v1954_v35 = vpack.c.bf16 %v1463_v38, %v1463_v38  ;;  %v1424_v4 = vmul.f32 %v3220_v31, %v1353_v0  ;;  %2209 = vrsqrt.f32 %v1229_v46  ;;  %v1139_v6 = vmul.f32 0.0625, %v1003_v17  ;;  %v3774_v17 = vld [vmem:[#allocation18_spill] sm:$0xff] }
 0x252   :  { %v2198_v12 = vpop.eup %2197  ;;  %v1985_v48 = vpack.c.bf16 %v1494_v7, %v1494_v7  ;;  %v1397_v43 = vmul.f32 %v3220_v31, %v1326_v8  ;;  %2211 = vrsqrt.f32 %v1202_v9  ;;  %v1170_v24 = vmul.f32 0.0625, %v1096_v16 }
 0x253   :  { %v2200_v14 = vpop.eup %2199  ;;  %1784 = vst.msk [vmem:[%s3690_s5 + $0x44] sm:$0xf] %vm1766_vm2, %v1954_v35  ;;  %v1495_v1 = vadd.f32 %v3226_v59, %v1424_v4  ;;  %v1327_v29 = vmul.f32 %v2198_v12, %v3070_v2  ;;  %v1203_v55 = vadd.f32 1e-06, %v1139_v6  ;;  %v3775_v6 = vld [vmem:[#allocation2_spill] sm:$0xff] }
 0x254   :  { %1815 = vst.msk [vmem:[%s3690_s5 + $0xc0] sm:$0xf] %vm1766_vm2, %v1985_v48  ;;  %v1468_v36 = vadd.f32 %v3226_v59, %v1397_v43  ;;  %v1358_v51 = vmul.f32 %v2200_v14, %v3086_v32  ;;  %v1234_v19 = vadd.f32 1e-06, %v1170_v24  ;;  %v1099_v40 = vpop.xlane.xlu1 %1098  ;;  %v994_v54 = vpop.xlane.xlu0 %993 }
 0x255   :  { %v1986_v58 = vpack.c.bf16 %v1495_v1, %v1495_v1  ;;  %v1398_v20 = vmul.f32 %v3220_v31, %v1327_v29  ;;  %2213 = vrsqrt.f32 %v1203_v55  ;;  %v1171_v11 = vmul.f32 0.0625, %v1099_v40  ;;  %v3776_v40 = vld [vmem:[#allocation3_spill] sm:$0xff] }
 0x256   :  { %v2202_v18 = vpop.eup %2201  ;;  %v1959_v2 = vpack.c.bf16 %v1468_v36, %v1468_v36  ;;  %v1429_v61 = vmul.f32 %v3220_v31, %v1358_v51  ;;  %2215 = vrsqrt.f32 %v1234_v19  ;;  %v1136_v3 = vmul.f32 0.0625, %v994_v54 }
 0x257   :  { %v2204_v5 = vpop.eup %2203  ;;  %1816 = vst.msk [vmem:[%s3690_s5 + $0xc4] sm:$0xf] %vm1766_vm2, %v1986_v58  ;;  %v1469_v32 = vadd.f32 %v3226_v59, %v1398_v20  ;;  %v1359_v53 = vmul.f32 %v2202_v18, %v3083_v13  ;;  %v1235_v39 = vadd.f32 1e-06, %v1171_v11  ;;  %v3777_v11 = vld [vmem:[#allocation4_spill] sm:$0xff] }
 0x258   :  { %1789 = vst.msk [vmem:[%s3690_s5 + $0x58] sm:$0xf] %vm1766_vm2, %v1959_v2  ;;  %v1500_v21 = vadd.f32 %v3226_v59, %v1429_v61  ;;  %v1324_v52 = vmul.f32 %v2204_v5, %v3097_v22  ;;  %v1200_v42 = vadd.f32 1e-06, %v1136_v3  ;;  %v997_v41 = vpop.xlane.xlu1 %996  ;;  %v1090_v26 = vpop.xlane.xlu0 %1089 }
 0x259   :  { %v1960_v34 = vpack.c.bf16 %v1469_v32, %v1469_v32  ;;  %v1430_v56 = vmul.f32 %v3220_v31, %v1359_v53  ;;  %2217 = vrsqrt.f32 %v1235_v39  ;;  %v1137_v50 = vmul.f32 0.0625, %v997_v41 }
 0x25a   :  { %v2206_v33 = vpop.eup %2205  ;;  %v1991_v13 = vpack.c.bf16 %v1500_v21, %v1500_v21  ;;  %v1395_v62 = vmul.f32 %v3220_v31, %v1324_v52  ;;  %2219 = vrsqrt.f32 %v1200_v42  ;;  %v1168_v44 = vmul.f32 0.0625, %v1090_v26  ;;  %v3778_v26 = vld [vmem:[#allocation5_spill] sm:$0xff] }
 0x25b   :  { %v2208_v45 = vpop.eup %2207  ;;  %1790 = vst.msk [vmem:[%s3690_s5 + $0x5c] sm:$0xf] %vm1766_vm2, %v1960_v34  ;;  %v1501_v22 = vadd.f32 %v3226_v59, %v1430_v56  ;;  %v1325_v15 = vmul.f32 %v2206_v33, %v3772_v60  ;;  %v1201_v49 = vadd.f32 1e-06, %v1137_v50 }
 0x25c   :  { %1821 = vst.msk [vmem:[%s3690_s5 + $0xd8] sm:$0xf] %vm1766_vm2, %v1991_v13  ;;  %v1466_v30 = vadd.f32 %v3226_v59, %v1395_v62  ;;  %v1356_v23 = vmul.f32 %v2208_v45, %v3773_v25  ;;  %v1232_v27 = vadd.f32 1e-06, %v1168_v44  ;;  %v1093_v57 = vpop.xlane.xlu1 %1092  ;;  %v1012_v37 = vpop.xlane.xlu0 %1011 }
 0x25d   :  { %v1992_v63 = vpack.c.bf16 %v1501_v22, %v1501_v22  ;;  %v1396_v28 = vmul.f32 %v3220_v31, %v1325_v15  ;;  %2221 = vrsqrt.f32 %v1201_v49  ;;  %v1169_v10 = vmul.f32 0.0625, %v1093_v57  ;;  %v3581_v22 = vld [vmem:[%s3688_s3] ss:$0 sm:$0xff] }
 0x25e   :  { %v2210_v38 = vpop.eup %2209  ;;  %v1957_v0 = vpack.c.bf16 %v1466_v30, %v1466_v30  ;;  %v1427_v46 = vmul.f32 %v3220_v31, %v1356_v23  ;;  %2223 = vrsqrt.f32 %v1232_v27  ;;  %v1142_v7 = vmul.f32 0.0625, %v1012_v37  ;;  %v3592_v27 = vld [vmem:[%s3689_s4] ss:$0 sm:$0xff]  ;;  %v3780_v37 = vld [vmem:[#allocation7_spill] sm:$0xff] }
 0x25f   :  { %v2212_v8 = vpop.eup %2211  ;;  %1822 = vst.msk [vmem:[%s3690_s5 + $0xdc] sm:$0xf] %vm1766_vm2, %v1992_v63  ;;  %v1467_v9 = vadd.f32 %v3226_v59, %v1396_v28  ;;  %v1357_v16 = vmul.f32 %v2210_v38, %v3774_v17  ;;  %v1233_v35 = vadd.f32 1e-06, %v1169_v10  ;;  %v3781_v38 = vld [vmem:[#allocation8_spill] sm:$0xff] }
 0x260   :  { %1787 = vst.msk [vmem:[%s3690_s5 + $0x50] sm:$0xf] %vm1766_vm2, %v1957_v0  ;;  %v1498_v4 = vadd.f32 %v3226_v59, %v1427_v46  ;;  %v1330_v12 = vmul.f32 %v2212_v8, %v3775_v6  ;;  %v1206_v48 = vadd.f32 1e-06, %v1142_v7  ;;  %v1015_v43 = vpop.xlane.xlu1 %1014 }
 0x261   :  { %v1958_v24 = vpack.c.bf16 %v1467_v9, %v1467_v9  ;;  %v1428_v14 = vmul.f32 %v3220_v31, %v1357_v16  ;;  %2225 = vrsqrt.f32 %v1233_v35  ;;  %v1143_v1 = vmul.f32 0.0625, %v1015_v43 }
 0x262   :  { %v2214_v29 = vpop.eup %2213  ;;  %v1989_v55 = vpack.c.bf16 %v1498_v4, %v1498_v4  ;;  %v1401_v36 = vmul.f32 %v3220_v31, %v1330_v12  ;;  %2227 = vrsqrt.f32 %v1206_v48 }
 0x263   :  { %v2216_v51 = vpop.eup %2215  ;;  %1788 = vst.msk [vmem:[%s3690_s5 + $0x54] sm:$0xf] %vm1766_vm2, %v1958_v24  ;;  %v1499_v19 = vadd.f32 %v3226_v59, %v1428_v14  ;;  %v1331_v54 = vmul.f32 %v2214_v29, %v3776_v40  ;;  %v1207_v58 = vadd.f32 1e-06, %v1143_v1  ;;  %v3782_v24 = vld [vmem:[#allocation20_spill] sm:$0xff] }
 0x264   :  { %1819 = vst.msk [vmem:[%s3690_s5 + $0xd0] sm:$0xf] %vm1766_vm2, %v1989_v55  ;;  %v1472_v20 = vadd.f32 %v3226_v59, %v1401_v36  ;;  %v1362_v18 = vmul.f32 %v2216_v51, %v3777_v11  ;;  %v1009_v2 = vpop.xlane.xlu1 %1008  ;;  %v1006_v61 = vpop.xlane.xlu0 %1005  ;;  %v3783_v55 = vld [vmem:[#allocation9_spill] sm:$0xff] }
 0x265   :  { %v1990_v3 = vpack.c.bf16 %v1499_v19, %v1499_v19  ;;  %v1402_v5 = vmul.f32 %v3220_v31, %v1331_v54  ;;  %2229 = vrsqrt.f32 %v1207_v58  ;;  %v1141_v32 = vmul.f32 0.0625, %v1009_v2 }
 0x266   :  { %v2218_v53 = vpop.eup %2217  ;;  %v1963_v39 = vpack.c.bf16 %v1472_v20, %v1472_v20  ;;  %v1433_v21 = vmul.f32 %v3220_v31, %v1362_v18  ;;  %v1140_v52 = vmul.f32 0.0625, %v1006_v61  ;;  %v3779_v31 = vld [vmem:[#allocation6_spill] sm:$0xff]  ;;  %v3784_v18 = vld [vmem:[#allocation21_spill] sm:$0xff] }
 0x267   :  { %v2220_v42 = vpop.eup %2219  ;;  %1820 = vst.msk [vmem:[%s3690_s5 + $0xd4] sm:$0xf] %vm1766_vm2, %v1990_v3  ;;  %v1473_v41 = vadd.f32 %v3226_v59, %v1402_v5  ;;  %v1363_v34 = vmul.f32 %v2218_v53, %v3778_v26  ;;  %v1205_v56 = vadd.f32 1e-06, %v1141_v32 }
 0x268   :  { %1793 = vst.msk [vmem:[%s3690_s5 + $0x68] sm:$0xf] %vm1766_vm2, %v1963_v39  ;;  %v1504_v50 = vadd.f32 %v3226_v59, %v1433_v21  ;;  %v1328_v33 = vmul.f32 %v2220_v42, %v3779_v31  ;;  %v1204_v13 = vadd.f32 1e-06, %v1140_v52  ;;  %v1105_v62 = vpop.xlane.xlu1 %1104  ;;  %v1102_v44 = vpop.xlane.xlu0 %1101  ;;  %v3785_v42 = vld [vmem:[#allocation13_spill] sm:$0xff] }
 0x269   :  { %v1964_v45 = vpack.c.bf16 %v1473_v41, %v1473_v41  ;;  %v1434_v60 = vmul.f32 %v3581_v22, %v1363_v34  ;;  %2231 = vrsqrt.f32 %v1205_v56  ;;  %v1173_v15 = vmul.f32 0.0625, %v1105_v62 }
 0x26a   :  { %v2222_v49 = vpop.eup %2221  ;;  %v1995_v30 = vpack.c.bf16 %v1504_v50, %v1504_v50  ;;  %v1399_v25 = vmul.f32 %v3581_v22, %v1328_v33  ;;  %2233 = vrsqrt.f32 %v1204_v13  ;;  %v1172_v59 = vmul.f32 0.0625, %v1102_v44  ;;  %v3786_v33 = vld [vmem:[#allocation10_spill] sm:$0xff] }
 0x26b   :  { %v2224_v23 = vpop.eup %2223  ;;  %1794 = vst.msk [vmem:[%s3690_s5 + $0x6c] sm:$0xf] %vm1766_vm2, %v1964_v45  ;;  %v1505_v57 = vadd.f32 %v3592_v27, %v1434_v60  ;;  %v1329_v63 = vmul.f32 %v2222_v49, %v3780_v37  ;;  %v1237_v28 = vadd.f32 1e-06, %v1173_v15  ;;  %v3787_v44 = vld [vmem:[#allocation14_spill] sm:$0xff] }
 0x26c   :  { %1825 = vst.msk [vmem:[%s3690_s5 + $0xe8] sm:$0xf] %vm1766_vm2, %v1995_v30  ;;  %v1470_v10 = vadd.f32 %v3592_v27, %v1399_v25  ;;  %v1360_v0 = vmul.f32 %v2224_v23, %v3781_v38  ;;  %v1236_v46 = vadd.f32 1e-06, %v1172_v59  ;;  %v1111_v7 = vpop.xlane.xlu1 %1110  ;;  %v1108_v8 = vpop.xlane.xlu0 %1107 }
 0x26d   :  { %v1996_v9 = vpack.c.bf16 %v1505_v57, %v1505_v57  ;;  %v1400_v17 = vmul.f32 %v3581_v22, %v1329_v63  ;;  %2235 = vrsqrt.f32 %v1237_v28  ;;  %v1175_v16 = vmul.f32 0.0625, %v1111_v7  ;;  %v3788_v57 = vld [vmem:[#allocation12_spill] sm:$0xff]  ;;  %v3789_v28 = vld [vmem:[#allocation11_spill] sm:$0xff] }
 0x26e   :  { %v2226_v35 = vpop.eup %2225  ;;  %v1961_v4 = vpack.c.bf16 %v1470_v10, %v1470_v10  ;;  %v1431_v6 = vmul.f32 %v3581_v22, %v1360_v0  ;;  %2237 = vrsqrt.f32 %v1236_v46  ;;  %v1174_v12 = vmul.f32 0.0625, %v1108_v8 }
 0x26f   :  { %v2228_v48 = vpop.eup %2227  ;;  %1826 = vst.msk [vmem:[%s3690_s5 + $0xec] sm:$0xf] %vm1766_vm2, %v1996_v9  ;;  %v1471_v43 = vadd.f32 %v3592_v27, %v1400_v17  ;;  %v1361_v14 = vmul.f32 %v2226_v35, %v3782_v24  ;;  %v1239_v1 = vadd.f32 1e-06, %v1175_v16 }
 0x270   :  { %1791 = vst.msk [vmem:[%s3690_s5 + $0x60] sm:$0xf] %vm1766_vm2, %v1961_v4  ;;  %v1502_v29 = vadd.f32 %v3592_v27, %v1431_v6  ;;  %v1334_v36 = vmul.f32 %v2228_v48, %v3783_v55  ;;  %v1238_v51 = vadd.f32 1e-06, %v1174_v12 }
 0x271   :  { %v1962_v19 = vpack.c.bf16 %v1471_v43, %v1471_v43  ;;  %v1432_v40 = vmul.f32 %v3581_v22, %v1361_v14  ;;  %2239 = vrsqrt.f32 %v1239_v1 }
 0x272   :  { %v2230_v54 = vpop.eup %2229  ;;  %v1993_v58 = vpack.c.bf16 %v1502_v29, %v1502_v29  ;;  %v1405_v20 = vmul.f32 %v3581_v22, %v1334_v36  ;;  %2241 = vrsqrt.f32 %v1238_v51 }
 0x273   :  { %1792 = vst.msk [vmem:[%s3690_s5 + $0x64] sm:$0xf] %vm1766_vm2, %v1962_v19  ;;  %v1503_v11 = vadd.f32 %v3592_v27, %v1432_v40  ;;  %v1335_v2 = vmul.f32 %v2230_v54, %v3784_v18 }
 0x274   :  { %1823 = vst.msk [vmem:[%s3690_s5 + $0xe0] sm:$0xf] %vm1766_vm2, %v1993_v58  ;;  %v1476_v61 = vadd.f32 %v3592_v27, %v1405_v20 }
 0x275   :  { %v1994_v3 = vpack.c.bf16 %v1503_v11, %v1503_v11  ;;  %v1406_v5 = vmul.f32 %v3581_v22, %v1335_v2 }
 0x276   :  { %v2232_v32 = vpop.eup %2231  ;;  %v1967_v53 = vpack.c.bf16 %v1476_v61, %v1476_v61 }
 0x277   :  { %v2234_v39 = vpop.eup %2233  ;;  %1824 = vst.msk [vmem:[%s3690_s5 + $0xe4] sm:$0xf] %vm1766_vm2, %v1994_v3  ;;  %v1477_v21 = vadd.f32 %v3592_v27, %v1406_v5  ;;  %v1333_v52 = vmul.f32 %v2232_v32, %v3181_v47 }
 0x278   :  { %1797 = vst.msk [vmem:[%s3690_s5 + $0x78] sm:$0xf] %vm1766_vm2, %v1967_v53  ;;  %v1332_v41 = vmul.f32 %v2234_v39, %v3785_v42 }
 0x279   :  { %v1968_v26 = vpack.c.bf16 %v1477_v21, %v1477_v21  ;;  %v1404_v34 = vmul.f32 %v3581_v22, %v1333_v52 }
 0x27a   :  { %v2236_v56 = vpop.eup %2235  ;;  %v1403_v50 = vmul.f32 %v3581_v22, %v1332_v41 }
 0x27b   :  { %v2238_v31 = vpop.eup %2237  ;;  %1798 = vst.msk [vmem:[%s3690_s5 + $0x7c] sm:$0xf] %vm1766_vm2, %v1968_v26  ;;  %v1475_v47 = vadd.f32 %v3592_v27, %v1404_v34  ;;  %v1365_v13 = vmul.f32 %v2236_v56, %v3786_v33 }
 0x27c   :  { %v1474_v62 = vadd.f32 %v3592_v27, %v1403_v50  ;;  %v1364_v45 = vmul.f32 %v2238_v31, %v3787_v44 }
 0x27d   :  { %v1966_v60 = vpack.c.bf16 %v1475_v47, %v1475_v47  ;;  %v1436_v15 = vmul.f32 %v3581_v22, %v1365_v13 }
 0x27e   :  { %v2240_v49 = vpop.eup %2239  ;;  %v1965_v30 = vpack.c.bf16 %v1474_v62, %v1474_v62  ;;  %v1435_v25 = vmul.f32 %v3581_v22, %v1364_v45 }
 0x27f   :  { %v2242_v59 = vpop.eup %2241  ;;  %1796 = vst.msk [vmem:[%s3690_s5 + $0x74] sm:$0xf] %vm1766_vm2, %v1966_v60  ;;  %v1507_v23 = vadd.f32 %v3592_v27, %v1436_v15  ;;  %v1367_v37 = vmul.f32 %v2240_v49, %v3788_v57 }
 0x280   :  { %1795 = vst.msk [vmem:[%s3690_s5 + $0x70] sm:$0xf] %vm1766_vm2, %v1965_v30  ;;  %v1506_v63 = vadd.f32 %v3592_v27, %v1435_v25  ;;  %v1366_v10 = vmul.f32 %v2242_v59, %v3789_v28 }
 0x281   :  { %v1998_v38 = vpack.c.bf16 %v1507_v23, %v1507_v23  ;;  %v1438_v0 = vmul.f32 %v3581_v22, %v1367_v37 }
 0x282   :  { %v1997_v46 = vpack.c.bf16 %v1506_v63, %v1506_v63  ;;  %v1437_v7 = vmul.f32 %v3581_v22, %v1366_v10 }
 0x283   :  { %1828 = vst.msk [vmem:[%s3690_s5 + $0xf4] sm:$0xf] %vm1766_vm2, %v1998_v38  ;;  %v1509_v8 = vadd.f32 %v3592_v27, %v1438_v0 }
 0x284   :  { %1827 = vst.msk [vmem:[%s3690_s5 + $0xf0] sm:$0xf] %vm1766_vm2, %v1997_v46  ;;  %v1508_v9 = vadd.f32 %v3592_v27, %v1437_v7 }
 0x285   :  { %v2000_v17 = vpack.c.bf16 %v1509_v8, %v1509_v8 }
 0x286   :  { %v1999_v16 = vpack.c.bf16 %v1508_v9, %v1508_v9 }
 0x287   :  { %1830 = vst.msk [vmem:[%s3690_s5 + $0xfc] sm:$0xf] %vm1766_vm2, %v2000_v17 }
 0x288   :  { %1829 = vst.msk [vmem:[%s3690_s5 + $0xf8] sm:$0xf] %vm1766_vm2, %v1999_v16 }

</bundles_post_ra>
